<compile_context>
chip_gen: v7x
topology: tpu7x:2x2x1
jax: 0.10.0
libtpu: 0.0.40
codegen_flags: <defaults>
</compile_context>

<pallas_src>
import functools

import jax
import jax.numpy as jnp
from jax import lax
from jax.experimental import pallas as pl
from jax.experimental.pallas import tpu as pltpu


_VMEM_LIMIT_BYTES = 48 * 1024 * 1024  # headroom under v7x's 64 MiB physical VMEM


# ---------------------------------------------------------------------------
# Fused kernel: one batch element per grid step.
# ---------------------------------------------------------------------------
def _fused_attention_kernel(x_ref, wqkv_ref, wproj_ref, bproj_ref, o_ref,
                            qkv_sc, ctx_sc, *, num_heads, scale):
    N, C = ctx_sc.shape
    D = C // num_heads

    x_b = x_ref[0]                                            # [N, C]

    # QKV projection (qkv_bias=False -> no bias add, no fabricated zero bias).
    # Column layout of the 3C axis matches PyTorch's reshape(B, N, 3, H, D):
    # q columns [0, C), k columns [C, 2C), v columns [2C, 3C); head h occupies
    # columns [h*D, (h+1)*D) within each section.
    qkv_sc[...] = jnp.dot(x_b, wqkv_ref[...],
                          preferred_element_type=jnp.float32)  # [N, 3C] f32

    # Per-head scaled-dot-product attention.  H is a small static constant, so
    # a static loop with static slices is free at trace time and keeps only one
    # [N, N] score tile live at a time.
    for h in range(num_heads):
        q = qkv_sc[:, h * D:(h + 1) * D]                       # [N, D]
        k = qkv_sc[:, C + h * D:C + (h + 1) * D]               # [N, D]
        v = qkv_sc[:, 2 * C + h * D:2 * C + (h + 1) * D]       # [N, D]

        # q @ k^T expressed directly as a last-dim contraction (no k.T relayout).
        s = lax.dot_general(q, k, (((1,), (1,)), ((), ())),
                            preferred_element_type=jnp.float32) * scale
        m = jnp.max(s, axis=-1, keepdims=True)
        p = jnp.exp(s - m)
        l = jnp.sum(p, axis=-1, keepdims=True)

        ctx_h = jnp.dot(p, v, preferred_element_type=jnp.float32)   # [N, D]

        # Softmax denominator on the EUP slot; one Newton step on the tiny
        # [N, 1] vector restores full f32 accuracy at negligible VPU cost.
        r = pl.reciprocal(l, approx=True)
        r = r * (2.0 - l * r)
        ctx_sc[:, h * D:(h + 1) * D] = ctx_h * r               # merge heads

    # Output projection + bias, written lane-dense as one (1, N, C) block.
    out = jnp.dot(ctx_sc[...].astype(wproj_ref.dtype), wproj_ref[...],
                  preferred_element_type=jnp.float32)
    out = out + bproj_ref[...].astype(jnp.float32)
    o_ref[0] = out.astype(o_ref.dtype)


# ---------------------------------------------------------------------------
# Full TemporalAttention forward (comb=False).
# ---------------------------------------------------------------------------
def temporal_attention_pallas(x, w_qkv, w_proj, b_proj, *, num_heads,
                              qk_scale=None):
    """x: [B, N, C].  w_qkv: [C, 3C], w_proj: [C, C] ([in, out] layout)."""
    B, N, C = x.shape
    H = num_heads
    D = C // H
    scale = float(qk_scale) if qk_scale is not None else D ** (-0.5)

    kernel = functools.partial(_fused_attention_kernel,
                               num_heads=H, scale=scale)
    b2d = b_proj.reshape(1, C)

    return pl.pallas_call(
        kernel,
        out_shape=jax.ShapeDtypeStruct((B, N, C), x.dtype),
        grid_spec=pltpu.PrefetchScalarGridSpec(
            num_scalar_prefetch=0,
            grid=(B,),
            in_specs=[
                pl.BlockSpec((1, N, C), lambda b: (b, 0, 0)),      # x batch row
                pl.BlockSpec((C, 3 * C), lambda b: (0, 0)),        # W_qkv resident
                pl.BlockSpec((C, C), lambda b: (0, 0)),            # W_proj resident
                pl.BlockSpec((1, C), lambda b: (0, 0)),            # b_proj resident
            ],
            out_specs=pl.BlockSpec((1, N, C), lambda b: (b, 0, 0)),
            scratch_shapes=[
                pltpu.VMEM((N, 3 * C), jnp.float32),   # per-batch qkv
                pltpu.VMEM((N, C), jnp.float32),       # merged-head context
            ],
        ),
        compiler_params=pltpu.CompilerParams(
            dimension_semantics=("parallel",),         # shards B over v7x's 2 TCs
            vmem_limit_bytes=_VMEM_LIMIT_BYTES),
    )(x, w_qkv, w_proj, b2d)


# ---------------------------------------------------------------------------
# Pure-JAX reference (HIGHEST precision so the comparison is meaningful).
# ---------------------------------------------------------------------------
def temporal_attention_reference(x, w_qkv, w_proj, b_proj, *, num_heads,
                                 qk_scale=None):
    B, N, C = x.shape
    H = num_heads
    D = C // H
    scale = qk_scale if qk_scale is not None else D ** (-0.5)
    hp = jax.lax.Precision.HIGHEST

    qkv = jnp.einsum("bnc,cd->bnd", x, w_qkv, precision=hp)
    qkv = qkv.reshape(B, N, 3, H, D).transpose(2, 0, 3, 1, 4)
    q, k, v = qkv[0], qkv[1], qkv[2]

    attn = jnp.einsum("bhnd,bhmd->bhnm", q, k, precision=hp) * scale
    attn = jax.nn.softmax(attn, axis=-1)
    ctx = jnp.einsum("bhnm,bhmd->bhnd", attn, v, precision=hp)
    ctx = ctx.transpose(0, 2, 1, 3).reshape(B, N, C)
    return jnp.einsum("bnc,co->bno", ctx, w_proj, precision=hp) + b_proj


if __name__ == "__main__":
    key = jax.random.PRNGKey(0)
    k_x, k_qkv, k_pw, k_pb = jax.random.split(key, 4)

    # Small shapes consistent with the module (dim divisible by num_heads).
    B, N = 2, 16
    dim = 64
    num_heads = 8

    x = jax.random.normal(k_x, (B, N, dim), dtype=jnp.float32)
    # Weights stored in [in, out] layout (transpose of PyTorch Linear's [out, in]).
    w_qkv = jax.random.normal(k_qkv, (dim, 3 * dim), jnp.float32) * 0.1
    w_proj = jax.random.normal(k_pw, (dim, dim), jnp.float32) * 0.1
    b_proj = jax.random.normal(k_pb, (dim,), jnp.float32) * 0.1

    fn = jax.jit(functools.partial(temporal_attention_pallas,
                                   num_heads=num_heads))
    out = jax.block_until_ready(fn(x, w_qkv, w_proj, b_proj))

    ref = temporal_attention_reference(x, w_qkv, w_proj, b_proj,
                                       num_heads=num_heads)
    assert out.shape == (B, N, dim)
    # Tighter than before, with margin for the MXU's f32 matmul passes
    # differing from the HIGHEST-precision XLA reference.
    max_err = float(jnp.max(jnp.abs(out - ref)))
    assert jnp.allclose(out, ref, atol=5e-3, rtol=5e-3), \
        f"mismatch vs reference, max abs err {max_err}"

    print("KERNEL_OK")
</pallas_src>

<mosaic_0001>
module attributes {stable_mosaic.version = 11 : i64} {
  func.func @_fused_attention_kernel(%arg0: i32, %arg1: memref<1x16x64xf32, #tpu.memory_space<vmem>>, %arg2: memref<64x192xf32, #tpu.memory_space<vmem>>, %arg3: memref<64x64xf32, #tpu.memory_space<vmem>>, %arg4: memref<1x64xf32, #tpu.memory_space<vmem>>, %arg5: memref<1x16x64xf32, #tpu.memory_space<vmem>>, %arg6: memref<16x192xf32, #tpu.memory_space<vmem>>, %arg7: memref<16x64xf32, #tpu.memory_space<vmem>>) attributes {dimension_semantics = [#tpu.dimension_semantics<parallel>], iteration_bounds = array<i64: 2>, scalar_prefetch = 0 : i64, scratch_operands = 2 : i64, tpu.core_type = #tpu.core_type<tc>, window_params = [{transform_indices = @transform_0, window_bounds = array<i64: 1, 16, 64>}, {pipeline_mode = #tpu.pipeline_mode<synchronous>, transform_indices = @transform_1, window_bounds = array<i64: 64, 192>}, {pipeline_mode = #tpu.pipeline_mode<synchronous>, transform_indices = @transform_2, window_bounds = array<i64: 64, 64>}, {pipeline_mode = #tpu.pipeline_mode<synchronous>, transform_indices = @transform_3, window_bounds = array<i64: 1, 64>}, {transform_indices = @transform_4, window_bounds = array<i64: 1, 16, 64>}]} {
    %c0 = arith.constant 0 : index
    %c0_0 = arith.constant 0 : index
    %c0_1 = arith.constant 0 : index
    %0 = vector.load %arg1[%c0, %c0_0, %c0_1] : memref<1x16x64xf32, #tpu.memory_space<vmem>>, vector<1x16x64xf32>
    %1 = vector.shape_cast %0 : vector<1x16x64xf32> to vector<16x64xf32>
    %c0_2 = arith.constant 0 : index
    %c0_3 = arith.constant 0 : index
    %2 = vector.load %arg2[%c0_2, %c0_3] : memref<64x192xf32, #tpu.memory_space<vmem>>, vector<64x192xf32>
    %cst = arith.constant dense<0.000000e+00> : vector<16x192xf32>
    %3 = tpu.matmul %1, %2, %cst {dimension_numbers = #tpu.dot_dimension_numbers<[1], [0], [0], [1], [0, 0, 1, 1], [], []>} : vector<16x64xf32>, vector<64x192xf32>, vector<16x192xf32> -> vector<16x192xf32>
    %c0_4 = arith.constant 0 : index
    %c0_5 = arith.constant 0 : index
    %4 = vector.load %arg6[%c0_4, %c0_5] : memref<16x192xf32, #tpu.memory_space<vmem>>, vector<16x192xf32>
    tpu.vector_store %arg6[%c0_4, %c0_5], %3 {strides = array<i32>} : memref<16x192xf32, #tpu.memory_space<vmem>>, vector<16x192xf32>,
    %c0_6 = arith.constant 0 : index
    %c0_7 = arith.constant 0 : index
    %5 = vector.load %arg6[%c0_6, %c0_7] : memref<16x192xf32, #tpu.memory_space<vmem>>, vector<16x8xf32>
    %c0_8 = arith.constant 0 : index
    %c64 = arith.constant 64 : index
    %6 = vector.load %arg6[%c0_8, %c64] : memref<16x192xf32, #tpu.memory_space<vmem>>, vector<16x8xf32>
    %c0_9 = arith.constant 0 : index
    %c128 = arith.constant 128 : index
    %7 = vector.load %arg6[%c0_9, %c128] : memref<16x192xf32, #tpu.memory_space<vmem>>, vector<16x8xf32>
    %cst_10 = arith.constant dense<0.000000e+00> : vector<16x16xf32>
    %8 = tpu.matmul %5, %6, %cst_10 {dimension_numbers = #tpu.dot_dimension_numbers<[1], [1], [0], [0], [0, 0, 1, 0], [], []>} : vector<16x8xf32>, vector<16x8xf32>, vector<16x16xf32> -> vector<16x16xf32>
    %cst_11 = arith.constant 0.353553385 : f32
    %9 = vector.broadcast %cst_11 : f32 to vector<16x16xf32>
    %10 = arith.mulf %8, %9 : vector<16x16xf32>
    %cst_12 = arith.constant dense<0xFF800000> : vector<16xf32>
    %11 = vector.multi_reduction <maximumf>, %10, %cst_12 [1] : vector<16x16xf32> to vector<16xf32>
    %12 = vector.shape_cast %11 : vector<16xf32> to vector<16x1xf32>
    %13 = vector.broadcast %12 : vector<16x1xf32> to vector<16x16xf32>
    %14 = arith.subf %10, %13 : vector<16x16xf32>
    %15 = math.exp %14 : vector<16x16xf32>
    %cst_13 = arith.constant dense<0.000000e+00> : vector<16xf32>
    %16 = vector.multi_reduction <add>, %15, %cst_13 [1] : vector<16x16xf32> to vector<16xf32>
    %17 = vector.shape_cast %16 : vector<16xf32> to vector<16x1xf32>
    %cst_14 = arith.constant dense<0.000000e+00> : vector<16x8xf32>
    %18 = tpu.matmul %15, %7, %cst_14 {dimension_numbers = #tpu.dot_dimension_numbers<[1], [0], [0], [1], [0, 0, 1, 1], [], []>} : vector<16x16xf32>, vector<16x8xf32>, vector<16x8xf32> -> vector<16x8xf32>
    %19 = tpu.reciprocal %17 {approx = true} : vector<16x1xf32> -> vector<16x1xf32>
    %20 = arith.mulf %17, %19 : vector<16x1xf32>
    %cst_15 = arith.constant 2.000000e+00 : f32
    %21 = vector.broadcast %cst_15 : f32 to vector<16x1xf32>
    %22 = arith.subf %21, %20 : vector<16x1xf32>
    %23 = arith.mulf %19, %22 : vector<16x1xf32>
    %24 = vector.broadcast %23 : vector<16x1xf32> to vector<16x8xf32>
    %25 = arith.mulf %18, %24 : vector<16x8xf32>
    %c0_16 = arith.constant 0 : index
    %c0_17 = arith.constant 0 : index
    %26 = vector.load %arg7[%c0_16, %c0_17] : memref<16x64xf32, #tpu.memory_space<vmem>>, vector<16x8xf32>
    tpu.vector_store %arg7[%c0_16, %c0_17], %25 {strides = array<i32>} : memref<16x64xf32, #tpu.memory_space<vmem>>, vector<16x8xf32>,
    %c0_18 = arith.constant 0 : index
    %c8 = arith.constant 8 : index
    %27 = vector.load %arg6[%c0_18, %c8] : memref<16x192xf32, #tpu.memory_space<vmem>>, vector<16x8xf32>
    %c0_19 = arith.constant 0 : index
    %c72 = arith.constant 72 : index
    %28 = vector.load %arg6[%c0_19, %c72] : memref<16x192xf32, #tpu.memory_space<vmem>>, vector<16x8xf32>
    %c0_20 = arith.constant 0 : index
    %c136 = arith.constant 136 : index
    %29 = vector.load %arg6[%c0_20, %c136] : memref<16x192xf32, #tpu.memory_space<vmem>>, vector<16x8xf32>
    %cst_21 = arith.constant dense<0.000000e+00> : vector<16x16xf32>
    %30 = tpu.matmul %27, %28, %cst_21 {dimension_numbers = #tpu.dot_dimension_numbers<[1], [1], [0], [0], [0, 0, 1, 0], [], []>} : vector<16x8xf32>, vector<16x8xf32>, vector<16x16xf32> -> vector<16x16xf32>
    %cst_22 = arith.constant 0.353553385 : f32
    %31 = vector.broadcast %cst_22 : f32 to vector<16x16xf32>
    %32 = arith.mulf %30, %31 : vector<16x16xf32>
    %cst_23 = arith.constant dense<0xFF800000> : vector<16xf32>
    %33 = vector.multi_reduction <maximumf>, %32, %cst_23 [1] : vector<16x16xf32> to vector<16xf32>
    %34 = vector.shape_cast %33 : vector<16xf32> to vector<16x1xf32>
    %35 = vector.broadcast %34 : vector<16x1xf32> to vector<16x16xf32>
    %36 = arith.subf %32, %35 : vector<16x16xf32>
    %37 = math.exp %36 : vector<16x16xf32>
    %cst_24 = arith.constant dense<0.000000e+00> : vector<16xf32>
    %38 = vector.multi_reduction <add>, %37, %cst_24 [1] : vector<16x16xf32> to vector<16xf32>
    %39 = vector.shape_cast %38 : vector<16xf32> to vector<16x1xf32>
    %cst_25 = arith.constant dense<0.000000e+00> : vector<16x8xf32>
    %40 = tpu.matmul %37, %29, %cst_25 {dimension_numbers = #tpu.dot_dimension_numbers<[1], [0], [0], [1], [0, 0, 1, 1], [], []>} : vector<16x16xf32>, vector<16x8xf32>, vector<16x8xf32> -> vector<16x8xf32>
    %41 = tpu.reciprocal %39 {approx = true} : vector<16x1xf32> -> vector<16x1xf32>
    %42 = arith.mulf %39, %41 : vector<16x1xf32>
    %cst_26 = arith.constant 2.000000e+00 : f32
    %43 = vector.broadcast %cst_26 : f32 to vector<16x1xf32>
    %44 = arith.subf %43, %42 : vector<16x1xf32>
    %45 = arith.mulf %41, %44 : vector<16x1xf32>
    %46 = vector.broadcast %45 : vector<16x1xf32> to vector<16x8xf32>
    %47 = arith.mulf %40, %46 : vector<16x8xf32>
    %c0_27 = arith.constant 0 : index
    %c8_28 = arith.constant 8 : index
    %48 = vector.load %arg7[%c0_27, %c8_28] : memref<16x64xf32, #tpu.memory_space<vmem>>, vector<16x8xf32>
    tpu.vector_store %arg7[%c0_27, %c8_28], %47 {strides = array<i32>} : memref<16x64xf32, #tpu.memory_space<vmem>>, vector<16x8xf32>,
    %c0_29 = arith.constant 0 : index
    %c16 = arith.constant 16 : index
    %49 = vector.load %arg6[%c0_29, %c16] : memref<16x192xf32, #tpu.memory_space<vmem>>, vector<16x8xf32>
    %c0_30 = arith.constant 0 : index
    %c80 = arith.constant 80 : index
    %50 = vector.load %arg6[%c0_30, %c80] : memref<16x192xf32, #tpu.memory_space<vmem>>, vector<16x8xf32>
    %c0_31 = arith.constant 0 : index
    %c144 = arith.constant 144 : index
    %51 = vector.load %arg6[%c0_31, %c144] : memref<16x192xf32, #tpu.memory_space<vmem>>, vector<16x8xf32>
    %cst_32 = arith.constant dense<0.000000e+00> : vector<16x16xf32>
    %52 = tpu.matmul %49, %50, %cst_32 {dimension_numbers = #tpu.dot_dimension_numbers<[1], [1], [0], [0], [0, 0, 1, 0], [], []>} : vector<16x8xf32>, vector<16x8xf32>, vector<16x16xf32> -> vector<16x16xf32>
    %cst_33 = arith.constant 0.353553385 : f32
    %53 = vector.broadcast %cst_33 : f32 to vector<16x16xf32>
    %54 = arith.mulf %52, %53 : vector<16x16xf32>
    %cst_34 = arith.constant dense<0xFF800000> : vector<16xf32>
    %55 = vector.multi_reduction <maximumf>, %54, %cst_34 [1] : vector<16x16xf32> to vector<16xf32>
    %56 = vector.shape_cast %55 : vector<16xf32> to vector<16x1xf32>
    %57 = vector.broadcast %56 : vector<16x1xf32> to vector<16x16xf32>
    %58 = arith.subf %54, %57 : vector<16x16xf32>
    %59 = math.exp %58 : vector<16x16xf32>
    %cst_35 = arith.constant dense<0.000000e+00> : vector<16xf32>
    %60 = vector.multi_reduction <add>, %59, %cst_35 [1] : vector<16x16xf32> to vector<16xf32>
    %61 = vector.shape_cast %60 : vector<16xf32> to vector<16x1xf32>
    %cst_36 = arith.constant dense<0.000000e+00> : vector<16x8xf32>
    %62 = tpu.matmul %59, %51, %cst_36 {dimension_numbers = #tpu.dot_dimension_numbers<[1], [0], [0], [1], [0, 0, 1, 1], [], []>} : vector<16x16xf32>, vector<16x8xf32>, vector<16x8xf32> -> vector<16x8xf32>
    %63 = tpu.reciprocal %61 {approx = true} : vector<16x1xf32> -> vector<16x1xf32>
    %64 = arith.mulf %61, %63 : vector<16x1xf32>
    %cst_37 = arith.constant 2.000000e+00 : f32
    %65 = vector.broadcast %cst_37 : f32 to vector<16x1xf32>
    %66 = arith.subf %65, %64 : vector<16x1xf32>
    %67 = arith.mulf %63, %66 : vector<16x1xf32>
    %68 = vector.broadcast %67 : vector<16x1xf32> to vector<16x8xf32>
    %69 = arith.mulf %62, %68 : vector<16x8xf32>
    %c0_38 = arith.constant 0 : index
    %c16_39 = arith.constant 16 : index
    %70 = vector.load %arg7[%c0_38, %c16_39] : memref<16x64xf32, #tpu.memory_space<vmem>>, vector<16x8xf32>
    tpu.vector_store %arg7[%c0_38, %c16_39], %69 {strides = array<i32>} : memref<16x64xf32, #tpu.memory_space<vmem>>, vector<16x8xf32>,
    %c0_40 = arith.constant 0 : index
    %c24 = arith.constant 24 : index
    %71 = vector.load %arg6[%c0_40, %c24] : memref<16x192xf32, #tpu.memory_space<vmem>>, vector<16x8xf32>
    %c0_41 = arith.constant 0 : index
    %c88 = arith.constant 88 : index
    %72 = vector.load %arg6[%c0_41, %c88] : memref<16x192xf32, #tpu.memory_space<vmem>>, vector<16x8xf32>
    %c0_42 = arith.constant 0 : index
    %c152 = arith.constant 152 : index
    %73 = vector.load %arg6[%c0_42, %c152] : memref<16x192xf32, #tpu.memory_space<vmem>>, vector<16x8xf32>
    %cst_43 = arith.constant dense<0.000000e+00> : vector<16x16xf32>
    %74 = tpu.matmul %71, %72, %cst_43 {dimension_numbers = #tpu.dot_dimension_numbers<[1], [1], [0], [0], [0, 0, 1, 0], [], []>} : vector<16x8xf32>, vector<16x8xf32>, vector<16x16xf32> -> vector<16x16xf32>
    %cst_44 = arith.constant 0.353553385 : f32
    %75 = vector.broadcast %cst_44 : f32 to vector<16x16xf32>
    %76 = arith.mulf %74, %75 : vector<16x16xf32>
    %cst_45 = arith.constant dense<0xFF800000> : vector<16xf32>
    %77 = vector.multi_reduction <maximumf>, %76, %cst_45 [1] : vector<16x16xf32> to vector<16xf32>
    %78 = vector.shape_cast %77 : vector<16xf32> to vector<16x1xf32>
    %79 = vector.broadcast %78 : vector<16x1xf32> to vector<16x16xf32>
    %80 = arith.subf %76, %79 : vector<16x16xf32>
    %81 = math.exp %80 : vector<16x16xf32>
    %cst_46 = arith.constant dense<0.000000e+00> : vector<16xf32>
    %82 = vector.multi_reduction <add>, %81, %cst_46 [1] : vector<16x16xf32> to vector<16xf32>
    %83 = vector.shape_cast %82 : vector<16xf32> to vector<16x1xf32>
    %cst_47 = arith.constant dense<0.000000e+00> : vector<16x8xf32>
    %84 = tpu.matmul %81, %73, %cst_47 {dimension_numbers = #tpu.dot_dimension_numbers<[1], [0], [0], [1], [0, 0, 1, 1], [], []>} : vector<16x16xf32>, vector<16x8xf32>, vector<16x8xf32> -> vector<16x8xf32>
    %85 = tpu.reciprocal %83 {approx = true} : vector<16x1xf32> -> vector<16x1xf32>
    %86 = arith.mulf %83, %85 : vector<16x1xf32>
    %cst_48 = arith.constant 2.000000e+00 : f32
    %87 = vector.broadcast %cst_48 : f32 to vector<16x1xf32>
    %88 = arith.subf %87, %86 : vector<16x1xf32>
    %89 = arith.mulf %85, %88 : vector<16x1xf32>
    %90 = vector.broadcast %89 : vector<16x1xf32> to vector<16x8xf32>
    %91 = arith.mulf %84, %90 : vector<16x8xf32>
    %c0_49 = arith.constant 0 : index
    %c24_50 = arith.constant 24 : index
    %92 = vector.load %arg7[%c0_49, %c24_50] : memref<16x64xf32, #tpu.memory_space<vmem>>, vector<16x8xf32>
    tpu.vector_store %arg7[%c0_49, %c24_50], %91 {strides = array<i32>} : memref<16x64xf32, #tpu.memory_space<vmem>>, vector<16x8xf32>,
    %c0_51 = arith.constant 0 : index
    %c32 = arith.constant 32 : index
    %93 = vector.load %arg6[%c0_51, %c32] : memref<16x192xf32, #tpu.memory_space<vmem>>, vector<16x8xf32>
    %c0_52 = arith.constant 0 : index
    %c96 = arith.constant 96 : index
    %94 = vector.load %arg6[%c0_52, %c96] : memref<16x192xf32, #tpu.memory_space<vmem>>, vector<16x8xf32>
    %c0_53 = arith.constant 0 : index
    %c160 = arith.constant 160 : index
    %95 = vector.load %arg6[%c0_53, %c160] : memref<16x192xf32, #tpu.memory_space<vmem>>, vector<16x8xf32>
    %cst_54 = arith.constant dense<0.000000e+00> : vector<16x16xf32>
    %96 = tpu.matmul %93, %94, %cst_54 {dimension_numbers = #tpu.dot_dimension_numbers<[1], [1], [0], [0], [0, 0, 1, 0], [], []>} : vector<16x8xf32>, vector<16x8xf32>, vector<16x16xf32> -> vector<16x16xf32>
    %cst_55 = arith.constant 0.353553385 : f32
    %97 = vector.broadcast %cst_55 : f32 to vector<16x16xf32>
    %98 = arith.mulf %96, %97 : vector<16x16xf32>
    %cst_56 = arith.constant dense<0xFF800000> : vector<16xf32>
    %99 = vector.multi_reduction <maximumf>, %98, %cst_56 [1] : vector<16x16xf32> to vector<16xf32>
    %100 = vector.shape_cast %99 : vector<16xf32> to vector<16x1xf32>
    %101 = vector.broadcast %100 : vector<16x1xf32> to vector<16x16xf32>
    %102 = arith.subf %98, %101 : vector<16x16xf32>
    %103 = math.exp %102 : vector<16x16xf32>
    %cst_57 = arith.constant dense<0.000000e+00> : vector<16xf32>
    %104 = vector.multi_reduction <add>, %103, %cst_57 [1] : vector<16x16xf32> to vector<16xf32>
    %105 = vector.shape_cast %104 : vector<16xf32> to vector<16x1xf32>
    %cst_58 = arith.constant dense<0.000000e+00> : vector<16x8xf32>
    %106 = tpu.matmul %103, %95, %cst_58 {dimension_numbers = #tpu.dot_dimension_numbers<[1], [0], [0], [1], [0, 0, 1, 1], [], []>} : vector<16x16xf32>, vector<16x8xf32>, vector<16x8xf32> -> vector<16x8xf32>
    %107 = tpu.reciprocal %105 {approx = true} : vector<16x1xf32> -> vector<16x1xf32>
    %108 = arith.mulf %105, %107 : vector<16x1xf32>
    %cst_59 = arith.constant 2.000000e+00 : f32
    %109 = vector.broadcast %cst_59 : f32 to vector<16x1xf32>
    %110 = arith.subf %109, %108 : vector<16x1xf32>
    %111 = arith.mulf %107, %110 : vector<16x1xf32>
    %112 = vector.broadcast %111 : vector<16x1xf32> to vector<16x8xf32>
    %113 = arith.mulf %106, %112 : vector<16x8xf32>
    %c0_60 = arith.constant 0 : index
    %c32_61 = arith.constant 32 : index
    %114 = vector.load %arg7[%c0_60, %c32_61] : memref<16x64xf32, #tpu.memory_space<vmem>>, vector<16x8xf32>
    tpu.vector_store %arg7[%c0_60, %c32_61], %113 {strides = array<i32>} : memref<16x64xf32, #tpu.memory_space<vmem>>, vector<16x8xf32>,
    %c0_62 = arith.constant 0 : index
    %c40 = arith.constant 40 : index
    %115 = vector.load %arg6[%c0_62, %c40] : memref<16x192xf32, #tpu.memory_space<vmem>>, vector<16x8xf32>
    %c0_63 = arith.constant 0 : index
    %c104 = arith.constant 104 : index
    %116 = vector.load %arg6[%c0_63, %c104] : memref<16x192xf32, #tpu.memory_space<vmem>>, vector<16x8xf32>
    %c0_64 = arith.constant 0 : index
    %c168 = arith.constant 168 : index
    %117 = vector.load %arg6[%c0_64, %c168] : memref<16x192xf32, #tpu.memory_space<vmem>>, vector<16x8xf32>
    %cst_65 = arith.constant dense<0.000000e+00> : vector<16x16xf32>
    %118 = tpu.matmul %115, %116, %cst_65 {dimension_numbers = #tpu.dot_dimension_numbers<[1], [1], [0], [0], [0, 0, 1, 0], [], []>} : vector<16x8xf32>, vector<16x8xf32>, vector<16x16xf32> -> vector<16x16xf32>
    %cst_66 = arith.constant 0.353553385 : f32
    %119 = vector.broadcast %cst_66 : f32 to vector<16x16xf32>
    %120 = arith.mulf %118, %119 : vector<16x16xf32>
    %cst_67 = arith.constant dense<0xFF800000> : vector<16xf32>
    %121 = vector.multi_reduction <maximumf>, %120, %cst_67 [1] : vector<16x16xf32> to vector<16xf32>
    %122 = vector.shape_cast %121 : vector<16xf32> to vector<16x1xf32>
    %123 = vector.broadcast %122 : vector<16x1xf32> to vector<16x16xf32>
    %124 = arith.subf %120, %123 : vector<16x16xf32>
    %125 = math.exp %124 : vector<16x16xf32>
    %cst_68 = arith.constant dense<0.000000e+00> : vector<16xf32>
    %126 = vector.multi_reduction <add>, %125, %cst_68 [1] : vector<16x16xf32> to vector<16xf32>
    %127 = vector.shape_cast %126 : vector<16xf32> to vector<16x1xf32>
    %cst_69 = arith.constant dense<0.000000e+00> : vector<16x8xf32>
    %128 = tpu.matmul %125, %117, %cst_69 {dimension_numbers = #tpu.dot_dimension_numbers<[1], [0], [0], [1], [0, 0, 1, 1], [], []>} : vector<16x16xf32>, vector<16x8xf32>, vector<16x8xf32> -> vector<16x8xf32>
    %129 = tpu.reciprocal %127 {approx = true} : vector<16x1xf32> -> vector<16x1xf32>
    %130 = arith.mulf %127, %129 : vector<16x1xf32>
    %cst_70 = arith.constant 2.000000e+00 : f32
    %131 = vector.broadcast %cst_70 : f32 to vector<16x1xf32>
    %132 = arith.subf %131, %130 : vector<16x1xf32>
    %133 = arith.mulf %129, %132 : vector<16x1xf32>
    %134 = vector.broadcast %133 : vector<16x1xf32> to vector<16x8xf32>
    %135 = arith.mulf %128, %134 : vector<16x8xf32>
    %c0_71 = arith.constant 0 : index
    %c40_72 = arith.constant 40 : index
    %136 = vector.load %arg7[%c0_71, %c40_72] : memref<16x64xf32, #tpu.memory_space<vmem>>, vector<16x8xf32>
    tpu.vector_store %arg7[%c0_71, %c40_72], %135 {strides = array<i32>} : memref<16x64xf32, #tpu.memory_space<vmem>>, vector<16x8xf32>,
    %c0_73 = arith.constant 0 : index
    %c48 = arith.constant 48 : index
    %137 = vector.load %arg6[%c0_73, %c48] : memref<16x192xf32, #tpu.memory_space<vmem>>, vector<16x8xf32>
    %c0_74 = arith.constant 0 : index
    %c112 = arith.constant 112 : index
    %138 = vector.load %arg6[%c0_74, %c112] : memref<16x192xf32, #tpu.memory_space<vmem>>, vector<16x8xf32>
    %c0_75 = arith.constant 0 : index
    %c176 = arith.constant 176 : index
    %139 = vector.load %arg6[%c0_75, %c176] : memref<16x192xf32, #tpu.memory_space<vmem>>, vector<16x8xf32>
    %cst_76 = arith.constant dense<0.000000e+00> : vector<16x16xf32>
    %140 = tpu.matmul %137, %138, %cst_76 {dimension_numbers = #tpu.dot_dimension_numbers<[1], [1], [0], [0], [0, 0, 1, 0], [], []>} : vector<16x8xf32>, vector<16x8xf32>, vector<16x16xf32> -> vector<16x16xf32>
    %cst_77 = arith.constant 0.353553385 : f32
    %141 = vector.broadcast %cst_77 : f32 to vector<16x16xf32>
    %142 = arith.mulf %140, %141 : vector<16x16xf32>
    %cst_78 = arith.constant dense<0xFF800000> : vector<16xf32>
    %143 = vector.multi_reduction <maximumf>, %142, %cst_78 [1] : vector<16x16xf32> to vector<16xf32>
    %144 = vector.shape_cast %143 : vector<16xf32> to vector<16x1xf32>
    %145 = vector.broadcast %144 : vector<16x1xf32> to vector<16x16xf32>
    %146 = arith.subf %142, %145 : vector<16x16xf32>
    %147 = math.exp %146 : vector<16x16xf32>
    %cst_79 = arith.constant dense<0.000000e+00> : vector<16xf32>
    %148 = vector.multi_reduction <add>, %147, %cst_79 [1] : vector<16x16xf32> to vector<16xf32>
    %149 = vector.shape_cast %148 : vector<16xf32> to vector<16x1xf32>
    %cst_80 = arith.constant dense<0.000000e+00> : vector<16x8xf32>
    %150 = tpu.matmul %147, %139, %cst_80 {dimension_numbers = #tpu.dot_dimension_numbers<[1], [0], [0], [1], [0, 0, 1, 1], [], []>} : vector<16x16xf32>, vector<16x8xf32>, vector<16x8xf32> -> vector<16x8xf32>
    %151 = tpu.reciprocal %149 {approx = true} : vector<16x1xf32> -> vector<16x1xf32>
    %152 = arith.mulf %149, %151 : vector<16x1xf32>
    %cst_81 = arith.constant 2.000000e+00 : f32
    %153 = vector.broadcast %cst_81 : f32 to vector<16x1xf32>
    %154 = arith.subf %153, %152 : vector<16x1xf32>
    %155 = arith.mulf %151, %154 : vector<16x1xf32>
    %156 = vector.broadcast %155 : vector<16x1xf32> to vector<16x8xf32>
    %157 = arith.mulf %150, %156 : vector<16x8xf32>
    %c0_82 = arith.constant 0 : index
    %c48_83 = arith.constant 48 : index
    %158 = vector.load %arg7[%c0_82, %c48_83] : memref<16x64xf32, #tpu.memory_space<vmem>>, vector<16x8xf32>
    tpu.vector_store %arg7[%c0_82, %c48_83], %157 {strides = array<i32>} : memref<16x64xf32, #tpu.memory_space<vmem>>, vector<16x8xf32>,
    %c0_84 = arith.constant 0 : index
    %c56 = arith.constant 56 : index
    %159 = vector.load %arg6[%c0_84, %c56] : memref<16x192xf32, #tpu.memory_space<vmem>>, vector<16x8xf32>
    %c0_85 = arith.constant 0 : index
    %c120 = arith.constant 120 : index
    %160 = vector.load %arg6[%c0_85, %c120] : memref<16x192xf32, #tpu.memory_space<vmem>>, vector<16x8xf32>
    %c0_86 = arith.constant 0 : index
    %c184 = arith.constant 184 : index
    %161 = vector.load %arg6[%c0_86, %c184] : memref<16x192xf32, #tpu.memory_space<vmem>>, vector<16x8xf32>
    %cst_87 = arith.constant dense<0.000000e+00> : vector<16x16xf32>
    %162 = tpu.matmul %159, %160, %cst_87 {dimension_numbers = #tpu.dot_dimension_numbers<[1], [1], [0], [0], [0, 0, 1, 0], [], []>} : vector<16x8xf32>, vector<16x8xf32>, vector<16x16xf32> -> vector<16x16xf32>
    %cst_88 = arith.constant 0.353553385 : f32
    %163 = vector.broadcast %cst_88 : f32 to vector<16x16xf32>
    %164 = arith.mulf %162, %163 : vector<16x16xf32>
    %cst_89 = arith.constant dense<0xFF800000> : vector<16xf32>
    %165 = vector.multi_reduction <maximumf>, %164, %cst_89 [1] : vector<16x16xf32> to vector<16xf32>
    %166 = vector.shape_cast %165 : vector<16xf32> to vector<16x1xf32>
    %167 = vector.broadcast %166 : vector<16x1xf32> to vector<16x16xf32>
    %168 = arith.subf %164, %167 : vector<16x16xf32>
    %169 = math.exp %168 : vector<16x16xf32>
    %cst_90 = arith.constant dense<0.000000e+00> : vector<16xf32>
    %170 = vector.multi_reduction <add>, %169, %cst_90 [1] : vector<16x16xf32> to vector<16xf32>
    %171 = vector.shape_cast %170 : vector<16xf32> to vector<16x1xf32>
    %cst_91 = arith.constant dense<0.000000e+00> : vector<16x8xf32>
    %172 = tpu.matmul %169, %161, %cst_91 {dimension_numbers = #tpu.dot_dimension_numbers<[1], [0], [0], [1], [0, 0, 1, 1], [], []>} : vector<16x16xf32>, vector<16x8xf32>, vector<16x8xf32> -> vector<16x8xf32>
    %173 = tpu.reciprocal %171 {approx = true} : vector<16x1xf32> -> vector<16x1xf32>
    %174 = arith.mulf %171, %173 : vector<16x1xf32>
    %cst_92 = arith.constant 2.000000e+00 : f32
    %175 = vector.broadcast %cst_92 : f32 to vector<16x1xf32>
    %176 = arith.subf %175, %174 : vector<16x1xf32>
    %177 = arith.mulf %173, %176 : vector<16x1xf32>
    %178 = vector.broadcast %177 : vector<16x1xf32> to vector<16x8xf32>
    %179 = arith.mulf %172, %178 : vector<16x8xf32>
    %c0_93 = arith.constant 0 : index
    %c56_94 = arith.constant 56 : index
    %180 = vector.load %arg7[%c0_93, %c56_94] : memref<16x64xf32, #tpu.memory_space<vmem>>, vector<16x8xf32>
    tpu.vector_store %arg7[%c0_93, %c56_94], %179 {strides = array<i32>} : memref<16x64xf32, #tpu.memory_space<vmem>>, vector<16x8xf32>,
    %c0_95 = arith.constant 0 : index
    %c0_96 = arith.constant 0 : index
    %181 = vector.load %arg7[%c0_95, %c0_96] : memref<16x64xf32, #tpu.memory_space<vmem>>, vector<16x64xf32>
    %c0_97 = arith.constant 0 : index
    %c0_98 = arith.constant 0 : index
    %182 = vector.load %arg3[%c0_97, %c0_98] : memref<64x64xf32, #tpu.memory_space<vmem>>, vector<64x64xf32>
    %cst_99 = arith.constant dense<0.000000e+00> : vector<16x64xf32>
    %183 = tpu.matmul %181, %182, %cst_99 {dimension_numbers = #tpu.dot_dimension_numbers<[1], [0], [0], [1], [0, 0, 1, 1], [], []>} : vector<16x64xf32>, vector<64x64xf32>, vector<16x64xf32> -> vector<16x64xf32>
    %c0_100 = arith.constant 0 : index
    %c0_101 = arith.constant 0 : index
    %184 = vector.load %arg4[%c0_100, %c0_101] : memref<1x64xf32, #tpu.memory_space<vmem>>, vector<1x64xf32>
    %185 = vector.broadcast %184 : vector<1x64xf32> to vector<16x64xf32>
    %186 = arith.addf %183, %185 : vector<16x64xf32>
    %c0_102 = arith.constant 0 : index
    %c0_103 = arith.constant 0 : index
    %c0_104 = arith.constant 0 : index
    %187 = vector.load %arg5[%c0_102, %c0_103, %c0_104] : memref<1x16x64xf32, #tpu.memory_space<vmem>>, vector<1x16x64xf32>
    %188 = vector.shape_cast %187 : vector<1x16x64xf32> to vector<16x64xf32>
    %189 = vector.shape_cast %186 : vector<16x64xf32> to vector<1x16x64xf32>
    tpu.vector_store %arg5[%c0_102, %c0_103, %c0_104], %189 {strides = array<i32>} : memref<1x16x64xf32, #tpu.memory_space<vmem>>, vector<1x16x64xf32>,
    return
  }
  func.func @transform_0(%arg0: i32) -> (i32, i32, i32) {
    %c0_i32 = arith.constant 0 : i32
    %c0_i32_0 = arith.constant 0 : i32
    %c0_i32_1 = arith.constant 0 : i32
    return %arg0, %c0_i32, %c0_i32_0 : i32, i32, i32
  }
  func.func @transform_1(%arg0: i32) -> (i32, i32) {
    %c0_i32 = arith.constant 0 : i32
    %c0_i32_0 = arith.constant 0 : i32
    %c0_i32_1 = arith.constant 0 : i32
    return %c0_i32, %c0_i32_0 : i32, i32
  }
  func.func @transform_2(%arg0: i32) -> (i32, i32) {
    %c0_i32 = arith.constant 0 : i32
    %c0_i32_0 = arith.constant 0 : i32
    %c0_i32_1 = arith.constant 0 : i32
    return %c0_i32, %c0_i32_0 : i32, i32
  }
  func.func @transform_3(%arg0: i32) -> (i32, i32) {
    %c0_i32 = arith.constant 0 : i32
    %c0_i32_0 = arith.constant 0 : i32
    %c0_i32_1 = arith.constant 0 : i32
    return %c0_i32, %c0_i32_0 : i32, i32
  }
  func.func @transform_4(%arg0: i32) -> (i32, i32, i32) {
    %c0_i32 = arith.constant 0 : i32
    %c0_i32_0 = arith.constant 0 : i32
    %c0_i32_1 = arith.constant 0 : i32
    return %arg0, %c0_i32, %c0_i32_0 : i32, i32, i32
  }
}

</mosaic_0001>

<bundles_post_ra>
// kernel: temporal_attention_pallas.1
= control target key start
LH: loop header
LB: loop body
LE: loop exit
PB: predicated region body
PF: predicated region fallthrough
CT: control target
= control target key end

     0   :  { %9 = vsyncpa [#allocation5], 0  ;;  %s3713_s0 = inlined_call_operand.hbm [shape: f32[2,16,64], index: 0, kind: input, shape index: {}]   ;;  %s3714_s1 = inlined_call_operand.hbm [shape: f32[64,192], index: 1, kind: input, shape index: {}]   ;;  %s3715_s2 = inlined_call_operand.hbm [shape: f32[64,64], index: 2, kind: input, shape index: {}]   ;;  %s3716_s3 = inlined_call_operand.vmem [shape: f32[1,64], index: 3, kind: input, shape index: {}]   ;;  %s3717_s4 = inlined_call_operand.hbm [shape: f32[2,16,64], index: 4, kind: output, shape index: {}]  }
   0x1   :  { %11 = vsyncpa [#allocation5 + $0x1], 0 }
   0x2   :  { %12 = vsyncpa [#allocation8], 0 }
   0x3   :  { %13 = vsyncpa [#allocation6], 0 }
   0x4   :  { %15 = vsyncpa [#allocation6 + $0x1], 0  ;;  %s3179_s15 = smov 0   ;;  %s3181_s16 = smov 0  }
   0x5   :  { %s3183_s17 = smov 0   ;;  %s3185_s18 = smov 0  }
   0x6 LB: > { %s3200_s19 = sadd.s32 4294967295, %s3127_s18   ;;  %s2354_s20 = sadd.s32 4294967294, %s3127_s18   ;;  %s3127_s18 = sphi %s3185_s18, %s3739_s18   ;;  %s3123_s17 = sphi %s3183_s17, %s3738_s17   ;;  %s3119_s16 = sphi %s3181_s16, %s3737_s16   ;;  %s3115_s15 = sphi %s3179_s15, %s3736_s15  }
   0x7   : > { %p41_p0 = scmp.ne.s32.totalorder %s3119_s16, %s3115_s15  ;;  %p3718_p1 = scmp.eq.s32.totalorder %s3200_s19, 0 }
   0x8   : > { %p134_p3 = scmp.eq.s32.totalorder %s2354_s20, 1  ;;  %p2355_p5 = scmp.ge.s32.totalorder %s3127_s18, 1 }
   0x9   : > { %p3209_p4 = por %p3718_p1, %p41_p0  ;;  %p141_p7 = scmp.lt.s32.totalorder %s3127_s18, 3 }
   0xa   : > { %p3214_p6 = por %p134_p3, %p41_p0  ;;  %s3129_s24 = smov [#allocation7]  }
   0xb   : > { %s3721_s21 = scalar_select %p3209_p4, 1, 0 }
   0xc   : > { %s3722_s22 = scalar_select %p3214_p6, 1, 0 }
   0xd   : > { %p3219_p8 = pnand %p2355_p5, %p141_p7  ;;  %s153_s25 = sshll.u32 %s3129_s24, 4  ;;  %s3223_s25 = int_to_ptr.vmem [resolvable:$true] %s153_s25 }
   0xe   : > { %s3130_s27 = smov [#allocation9]   ;;  %s2971_s5 = scalar_lea.hbm %s3714_s1, 2048 }
   0xf   : > { %p2756_p9 = pneg %p3219_p8  ;;  %s166_s28 = sshll.u32 %s3130_s27, 4  ;;  %s3234_s28 = int_to_ptr.vmem [resolvable:$true] %s166_s28 }
  0x10   : > { %p2972_p12 = scmp.ne.s32.totalorder %s3714_s1, %s2971_s5  ;;  %p2978_p5 = scmp.lt.u32.totalorder %s2971_s5, %s3714_s1 }
  0x11   : > { %p3230_p11 = pnand %p2756_p9, %p3718_p1 }
  0x13   : > { %p2973_p13 = pneg %p3230_p11 }
  0x15   : > { %p2974_p0 = pnand %p2973_p13, %p2972_p12 }
  0x17   : > { %p2975_p3 = pneg %p2974_p0 }
  0x19   : > { %p2980_p7 = pnand %p2978_p5, %p2975_p3 }
  0x1b   : > { %2983 = shalt.err (!%p2980_p7)
}
  0x1c   : > { %s2984_s10 = scalar_lea.vmem %s3223_s25, 2048  ;;  %p2992_p2 = scmp.lt.s32.totalorder %s3223_s25, %s3223_s25 }
  0x1d   : > { %p2985_p9 = scmp.ne.s32.totalorder %s3223_s25, %s2984_s10  ;;  %p2993_p12 = scmp.lt.s32.totalorder %s2984_s10, %s2984_s10 }
  0x1f   : > { %p2987_p10 = pnand %p2985_p9, %p2973_p13  ;;  %p2994_p0 = por %p2993_p12, %p2992_p2 }
  0x21   : > { %p2988_p1 = pneg %p2987_p10 }
  0x23   : > { %p2995_p6 = pnand %p2994_p0, %p2988_p1 }
  0x25   : > { %2998 = shalt.err (!%p2995_p6)
}
  0x26   : > { %s3131_s11 = smov 256   ;;  %s3132_s12 = smov 16  }
  0x27   : > { %2759 = dma.hbm_to_vmem [thread:$0]  (!%p3230_p11), %s3714_s1, 2048, %s3223_s25, [#allocation8], %s3131_s11, %s3131_s11, %s3132_s12  }
  0x28   : > { %s2999_s27 = scalar_lea.hbm %s3715_s2, 1024 }
  0x29   : > { %p3000_p2 = scmp.ne.s32.totalorder %s3715_s2, %s2999_s27  ;;  %p3006_p10 = scmp.lt.u32.totalorder %s2999_s27, %s3715_s2 }
  0x2b   : > { %p3002_p1 = pnand %p3000_p2, %p2973_p13 }
  0x2d   : > { %p3003_p6 = pneg %p3002_p1 }
  0x2f   : > { %p3008_p3 = pnand %p3006_p10, %p3003_p6 }
  0x31   : > { %3011 = shalt.err (!%p3008_p3)
}
  0x32   : > { %s3012_s25 = scalar_lea.vmem %s3234_s28, 1024  ;;  %p3020_p12 = scmp.lt.s32.totalorder %s3234_s28, %s3234_s28 }
  0x33   : > { %p3013_p5 = scmp.ne.s32.totalorder %s3234_s28, %s3012_s25  ;;  %p3021_p0 = scmp.lt.s32.totalorder %s3012_s25, %s3012_s25 }
  0x35   : > { %p3015_p7 = pnand %p3013_p5, %p2973_p13  ;;  %p3022_p2 = por %p3021_p0, %p3020_p12 }
  0x37   : > { %p3016_p9 = pneg %p3015_p7 }
  0x39   : > { %p3023_p1 = pnand %p3022_p2, %p3016_p9 }
  0x3b   : > { %3026 = shalt.err (!%p3023_p1)
}
  0x3c   : > { %s3133_s7 = smov 128   ;;  %s3134_s8 = smov 8  }
  0x3d   : > { %2762 = dma.hbm_to_vmem [thread:$0]  (!%p3230_p11), %s3715_s2, 1024, %s3234_s28, [#allocation8], %s3133_s7, %s3133_s7, %s3134_s8  }
  0x3e   : > { %s3292_s11 = sadd.s32 1, %s3127_s18   ;;  %s28_s13 = sadd.s32 1, %s3123_s17 }
  0x3f   : > { %s25_s12 = ssub.s32 %s3127_s18, %s3292_s11  ;;  %p35_p6 = scmp.ne.s32.totalorder %s3123_s17, %s3119_s16 }
  0x40   : > { %p26_p13 = scmp.eq.s32.totalorder %s25_s12, 0  ;;  %p36_p10 = scmp.eq.s32.totalorder %s3127_s18, 0 }
  0x41   : > { %p3725_p5 = scmp.eq.s32.totalorder %s3200_s19, 1  ;;  %p2773_p9 = scmp.lt.s32.totalorder %s3127_s18, 2 }
  0x42   : > { %s3301_s14 = scalar_select %p26_p13, %s3123_s17, %s28_s13  }
  0x43   : > { %p37_p3 = por %p36_p10, %p35_p6  ;;  %p3305_p7 = por %p3725_p5, %p35_p6 }
  0x44   : > { %s183_s20 = sand.u32 1, %s3123_s17   ;;  %s2425_s28 = sshll.u32 %s3127_s18, 8 }
  0x45   : > { %s3726_s26 = scalar_select %p3305_p7, 1, 0 }
  0x46   : > { %s2359_s24 = sshll.u32 %s183_s20, 4  ;;  %s3315_s30 = scalar_lea.hbm %s3713_s0, %s2425_s28 }
  0x47   : > { %s187_s5 = scalar_lea.vmem [#allocation4], %s2359_s24  ;;  %p3319_p11 = pnand %p2773_p9, %p37_p3 }
  0x48   : > { %s194_s6 = sshll.u32 %s187_s5, 4  ;;  %s3323_s9 = scalar_lea.sflag [#allocation5], %s183_s20  ;;  %s3317_s6 = int_to_ptr.vmem [resolvable:$true] %s194_s6 }
  0x49   : > { %s3027_s10 = scalar_lea.hbm %s3315_s30, 256  ;;  %p3029_p0 = pneg %p3319_p11 }
  0x4a   : > { %p3028_p12 = scmp.ne.s32.totalorder %s3315_s30, %s3027_s10  ;;  %s3032_s24 = scalar_lea.hbm %s3713_s0, 512 }
  0x4b   : > { %p3033_p13 = scmp.lt.u32.totalorder %s3315_s30, %s3713_s0  ;;  %p3034_p6 = scmp.lt.u32.totalorder %s3032_s24, %s3027_s10 }
  0x4c   : > { %p3030_p2 = pnand %p3029_p0, %p3028_p12  ;;  %p3036_p3 = scmp.lt.u32.totalorder %s3027_s10, %s3315_s30 }
  0x4d   : > { %p3035_p10 = por %p3034_p6, %p3033_p13 }
  0x4e   : > { %p3031_p1 = pneg %p3030_p2 }
  0x4f   : > { %p3037_p5 = por %p3036_p3, %p3035_p10 }
  0x51   : > { %p3038_p9 = pnand %p3037_p5, %p3031_p1 }
  0x53   : > { %3041 = shalt.err (!%p3038_p9)
}
  0x54   : > { %s3042_s20 = scalar_lea.vmem %s3317_s6, 256  ;;  %s3135_s29 = smov [#allocation4]  }
  0x55   : > { %p3043_p12 = scmp.ne.s32.totalorder %s3317_s6, %s3042_s20  ;;  %s3047_s5 = sshll.u32 %s3135_s29, 4  ;;  %s3048_s5 = int_to_ptr.vmem [resolvable:$false] %s3047_s5 }
  0x56   : > { %s3049_s12 = scalar_lea.vmem %s3048_s5, 512  ;;  %p3050_p4 = scmp.lt.s32.totalorder %s3317_s6, %s3048_s5 }
  0x57   : > { %p3045_p2 = pnand %p3043_p12, %p3029_p0  ;;  %p3051_p13 = scmp.lt.s32.totalorder %s3049_s12, %s3042_s20 }
  0x59   : > { %p3046_p7 = pneg %p3045_p2  ;;  %p3052_p6 = por %p3051_p13, %p3050_p4 }
  0x5b   : > { %p3053_p10 = pnand %p3052_p6, %p3046_p7 }
  0x5d   : > { %3056 = shalt.err (!%p3053_p10)
}
  0x5e   : > { %2766 = dma.hbm_to_vmem [thread:$0]  (!%p3319_p11), %s3315_s30, 256, %s3317_s6, %s3323_s9, %s3133_s7, %s3133_s7, %s3134_s8  }
  0x5f   : > { %206 = sbr.rel (%p3219_p8) target bundleno = 3720 (0xe88), region = 36  ;;  %s3357_s10 = sand.u32 (!%p3219_p8), 1, %s3119_s16  }
  0x60   : > { %s2363_s13 = sshll.u32 (!%p3219_p8), %s3357_s10, 4  ;;  %s209_s24 = scalar_lea.sflag (!%p3219_p8), [#allocation5], %s3357_s10 }
  0x61   : > { %s3363_s25 = scalar_lea.vmem (!%p3219_p8), [#allocation4], %s2363_s13  ;;  %p3728_p4 = scmp.ne.s32.totalorder (!%p3219_p8), %s3721_s21, 0 }
  0x66   : > { %3102 = dma.done.wait (%p3728_p4), %s209_s24, 256  }
  0x67   : > { %3104 = vsyncadd (%p3728_p4), %s209_s24, 4294967040  ;;  %p3729_p7 = scmp.eq.s32.totalorder %s3200_s19, 0 }
  0x69   : > { %3106 = dma.done.wait (%p3729_p7), [#allocation8], 3072   ;;  %p3730_p8 = pmov %p3729_p7 }
  0x6a   : > { %v3136_v0 = vmov 0.0   ;;  %v248_v1 = vld [vmem:[#allocation7 + $0x8] sm:$0xff]  ;;  %v250_v2 = vld [vmem:[#allocation7 + $0x18] sm:$0xff]  ;;  %v247_v3 = vld [vmem:[#allocation7] sm:$0xff]  ;;  %vm263_vm0 = vcmask 523264   ;;  %vm361_vm1 = vcmask 64512  }
  0x6b   : > { %3108 = vsyncadd (%p3730_p8), [#allocation8], 4294964224  ;;  %334 = vmatprep.mubr.f32.mxu0 %v3136_v0  ;;  %v2632_v4 = vpack.c.bf16 %v250_v2, %v248_v1  ;;  %v249_v5 = vld [vmem:[#allocation7 + $0x10] sm:$0xff]  ;;  %v252_v6 = vld [vmem:[#allocation7 + $0x28] sm:$0xff]  ;;  %s3137_s21 = smov 64   ;;  %vm447_vm3 = vcmask 130048  }
  0x6c   : > { %v254_v7 = vld [vmem:[#allocation7 + $0x38] sm:$0xff]  ;;  %v2634_v8 = vpack.c.bf16 %v249_v5, %v247_v3  ;;  %v251_v10 = vld [vmem:[#allocation7 + $0x20] sm:$0xff]  ;;  %v253_v11 = vld [vmem:[#allocation7 + $0x30] sm:$0xff]  ;;  %s3138_s23 = smov 56   ;;  %s3139_s7 = smov 120   ;;  %vm783_vm4 = vcmask 130112  }
  0x6d   : > { %v2636_v9 = vpack.c.bf16 %v254_v7, %v252_v6  ;;  %v256_v12 = vld [vmem:[#allocation7 + $0x48] sm:$0xff]  ;;  %2633 = vmatprep.subr.bf16.mxu0 %v2632_v4  ;;  %v258_v13 = vld [vmem:[#allocation7 + $0x58] sm:$0xff]  ;;  %v2638_v14 = vpack.c.bf16 %v253_v11, %v251_v10  ;;  %v255_v16 = vld [vmem:[#allocation7 + $0x40] sm:$0xff]  ;;  %s3140_s8 = smov 112   ;;  %s3141_s30 = smov 48   ;;  %vm1010_vm5 = vcmask 195712  }
  0x6e   : > { %2635 = vmatpush1.bf16.msra.mxu0 %v2634_v8  ;;  %v2640_v15 = vpack.c.bf16 %v258_v13, %v256_v12  ;;  %v257_v17 = vld [vmem:[#allocation7 + $0x50] sm:$0xff]  ;;  %v260_v18 = vld [vmem:[#allocation7 + $0x68] sm:$0xff]  ;;  %v262_v19 = vld [vmem:[#allocation7 + $0x78] sm:$0xff]  ;;  %s3142_s6 = smov 40   ;;  %s3143_s9 = smov 104   ;;  %vm1237_vm6 = vcmask 261312  }
  0x6f   : > { %2637 = vmatprep.subr.bf16.mxu0 %v2636_v9  ;;  %v2642_v20 = vpack.c.bf16 %v257_v17, %v255_v16  ;;  %v2644_v21 = vpack.c.bf16 %v262_v19, %v260_v18  ;;  %v259_v22 = vld [vmem:[#allocation7 + $0x60] sm:$0xff]  ;;  %v261_v23 = vld [vmem:[#allocation7 + $0x70] sm:$0xff]  ;;  %v246_v26 = vld [vmem:[%s3363_s25 + $0x8] sm:$0xff]  ;;  %s3144_s28 = smov 32   ;;  %s3145_s27 = smov 96   ;;  %vm1464_vm7 = vcmask 326912  }
  0x70   : > { %v2646_v24 = vpack.c.bf16 %v261_v23, %v259_v22  ;;  %v245_v25 = vld [vmem:[%s3363_s25] sm:$0xff]  ;;  %vm3394_vm2 = vmpackc.low %vm361_vm1, %vm361_vm1  ;;  %s3146_s20 = smov 24   ;;  %s3147_s29 = smov 88   ;;  %vm1691_vm8 = vcmask 392512   ;;  %vm1918_vm9 = vcmask 458112   ;;  %vm2145_vm10 = vcmask 523712  }
  0x71   : > { %s3148_s5 = smov 16   ;;  %s3149_s12 = smov 80  }
  0x72   : > { %2639 = vmatpush1.bf16.msra.mxu0 %v2638_v14  ;;  %s3150_s24 = smov 8   ;;  %s3151_s25 = smov 72  }
  0x73   : > { %2641 = vmatprep.subr.bf16.mxu0 %v2640_v15  ;;  %p3733_p0 = scmp.ne.s32.totalorder %s3726_s26, 0 }
  0x76   : > { %2643 = vmatpush1.bf16.msra.mxu0 %v2642_v20 }
  0x77   : > { %2645 = vmatprep.subr.bf16.mxu0 %v2644_v21 }
  0x7a   : > { %2647 = vmatpush1.bf16.msra.mxu0 %v2646_v24 }
  0x7d   : > { %2367 = vmatmul.mubr.msk.f32.vlgmr.msra.gmra.mrb[0].mxu0 %vm263_vm0, %v245_v25 }
  0x7e   : > { %340 = vmatprep.mubr.f32.mxu0 %v3136_v0 }
  0x81   : > { %2368 = vmatmul.mubr.msk.f32.gmra.mrb[2].mxu0 %vm263_vm0, %v246_v26 }
 0x150   : > { %v3377_v27 = vpop.f32.mrb[0].mxu0 }
 0x151   : > { %v338_v28 = vpop.f32.mrb[1].mxu0  ;;  %2505 = vmatprep.mubr.msk.f32.mxu0 %vm361_vm1, %v3377_v27 }
 0x152   : > { %348 = vst.msk [vmem:[#allocation2 + $0x8] sm:$0xff] %vm263_vm0, %v338_v28 }
 0x154   : > { %v3382_v29 = vpop.f32.mrb[2].mxu0 }
 0x155   : > { %v344_v30 = vpop.f32.mrb[3].mxu0  ;;  %v3386_v31 = vpack.i.bf16 %v3382_v29, %v3377_v27 }
 0x156   : > { %350 = vst.msk [vmem:[#allocation2 + $0x18] sm:$0xff] %vm263_vm0, %v344_v30 }
 0x157   : > { %2833 = vrot.lane.b32.xlu0 %v3386_v31, %s3137_s21 }
 0x159   : > { %v353_v32 = vld [vmem:[#allocation2 + $0x8] sm:$0xff] }
 0x15d   : > { %v354_v33 = vld [vmem:[#allocation2 + $0x18] sm:$0xff] }
 0x15e   : > { %v2654_v34 = vpack.c.bf16 %v354_v33, %v353_v32  ;;  %v3390_v35 = vpack.i.bf16 %v354_v33, %v353_v32 }
 0x160   : > { %2655 = vmatprep.subr.bf16.mxu1 %v2654_v34 }
 0x161   : > { %2657 = vmatpush3.bf16.msra.mxu1 %v2654_v34 }
 0x1c9   : > { %v2834_v36 = vpop.permute.xlu0 %2833 }
 0x1ca   : > { %v2836_v37 = vunpack.i.h.bf16 %v2834_v36  ;;  %v2835_v38 = vunpack.i.l.bf16 %v2834_v36 }
 0x1cc   : > { %v2648_v40 = vpack.c.bf16 %v2836_v37, %v2835_v38 }
 0x1ce   : > { %2650 = vmatprep.subr.msk.bf16.mxu0 %vm3394_vm2, %v2648_v40 }
 0x1cf   : > { %2653 = vmatpush3.bf16.xpose.msk.msra.mxu0 %vm3394_vm2, %v2648_v40 }
 0x1d6   : > { %2506 = vmatmul.mubr.msk.f32.vlgmr.msra.gmra.mrb[4].mxu0 %vm361_vm1, %v3382_v29 }
 0x2a9   : > { %v2507_v41 = vpop.f32.mrb[4].mxu0 }
 0x2aa   : > { %v446_v42 = vmul.f32 0.35355338, %v2507_v41  ;;  %v436_v43 = vpop.f32.mrb[5].mxu0 }
 0x2ab   : > { %v445_v44 = vmul.f32 0.35355338, %v436_v43 }
 0x2ac   : > { %v451_v45 = vsel %vm447_vm3, %v446_v42, -inf }
 0x2ad   : > { %452 = vmax.xlane.f32.xlu1 %v451_v45  ;;  %v448_v46 = vsel %vm447_vm3, %v445_v44, -inf }
 0x2ae   : > { %449 = vmax.xlane.f32.xlu0 %v448_v46 }
 0x2be   : > { %2838 = vrot.lane.b32.xlu1 %v3386_v31, %s3138_s23 }
 0x2c2   : > { %565 = vrot.lane.b32.xlu1 %v3377_v27, %s3139_s7 }
 0x2c4   : > { %794 = vrot.lane.b32.xlu0 %v3382_v29, %s3140_s8 }
 0x2c6   : > { %2843 = vrot.lane.b32.xlu1 %v3386_v31, %s3141_s30 }
 0x2ca   : > { %567 = vrot.lane.b32.xlu1 %v3382_v29, %s3139_s7 }
 0x2ce   : > { %792 = vrot.lane.b32.xlu1 %v3377_v27, %s3140_s8 }
 0x2d2   : > { %2848 = vrot.lane.b32.xlu1 %v3390_v35, %s3139_s7 }
 0x2d6   : > { %2858 = vrot.lane.b32.xlu1 %v3386_v31, %s3142_s6 }
 0x33a   : > { %v453_v47 = vpop.xlane.xlu1 %452 }
 0x33b   : > { %v455_v48 = vsub.f32 %v446_v42, %v453_v47  ;;  %v450_v49 = vpop.xlane.xlu0 %449 }
 0x33c   : > { %v454_v50 = vsub.f32 %v445_v44, %v450_v49 }
 0x33d   : > { %v458_v51 = vmul.f32 1.442695, %v455_v48 }
 0x33e   : > { %v456_v52 = vmul.f32 1.442695, %v454_v50  ;;  %v2839_v53 = vpop.permute.xlu1 %2838 }
 0x33f   : > { %v2841_v54 = vunpack.i.h.bf16 %v2839_v53  ;;  %v2840_v55 = vunpack.i.l.bf16 %v2839_v53  ;;  %v795_v6 = vpop.permute.xlu0 %794 }
 0x340   : > { %2907 = vpow2.f32 %v456_v52 }
 0x341   : > { %2909 = vpow2.f32 %v458_v51  ;;  %v2658_v56 = vpack.c.bf16 %v2841_v54, %v2840_v55 }
 0x342   : > { %v566_v57 = vpop.permute.xlu1 %565 }
 0x343   : > { %2660 = vmatprep.subr.msk.bf16.mxu1 %vm3394_vm2, %v2658_v56 }
 0x346   : > { %v2844_v58 = vpop.permute.xlu1 %2843 }
 0x347   : > { %v2846_v59 = vunpack.i.h.bf16 %v2844_v58  ;;  %v2845_v60 = vunpack.i.l.bf16 %v2844_v58 }
 0x349   : > { %v2668_v0 = vpack.c.bf16 %v2846_v59, %v2845_v60 }
 0x34a   : > { %v3421_v61 = vpop.eup %2907  ;;  %v568_v62 = vpop.permute.xlu1 %567 }
 0x34b   : > { %v3423_v63 = vpop.eup %2909  ;;  %2512 = vmatprep.mubr.msk.f32.mxu1 %vm447_vm3, %v3421_v61 }
 0x34c   : > { %2513 = vmatmul.mubr.msk.f32.vlgmr.msra.gmra.mrb[0].mxu1 %vm447_vm3, %v3423_v63 }
 0x34d   : > { %2663 = vmatpush3.bf16.xpose.msk.msra.mxu1 %vm3394_vm2, %v2658_v56  ;;  %2519 = vmatprep.mubr.msk.f32.mxu1 %vm361_vm1, %v566_v57 }
 0x34e   : > { %2670 = vmatprep.subr.msk.bf16.mxu1 %vm3394_vm2, %v2668_v0  ;;  %v793_v1 = vpop.permute.xlu1 %792 }
 0x352   : > { %v2849_v2 = vpop.permute.xlu1 %2848 }
 0x353   : > { %v2851_v3 = vunpack.i.h.bf16 %v2849_v2  ;;  %v2850_v4 = vunpack.i.l.bf16 %v2849_v2 }
 0x354   : > { %2520 = vmatmul.mubr.msk.f32.vlgmr.msra.gmra.mrb[2].mxu1 %vm361_vm1, %v568_v62 }
 0x355   : > { %v2664_v5 = vpack.c.bf16 %v2851_v3, %v2850_v4  ;;  %2673 = vmatpush3.bf16.xpose.msk.msra.mxu1 %vm3394_vm2, %v2668_v0  ;;  %2533 = vmatprep.mubr.msk.f32.mxu1 %vm361_vm1, %v793_v1 }
 0x356   : > { %v2859_v21 = vpop.permute.xlu1 %2858 }
 0x357   : > { %2665 = vmatprep.subr.bf16.mxu0 %v2664_v5  ;;  %v2861_v41 = vunpack.i.h.bf16 %v2859_v21  ;;  %v2860_v42 = vunpack.i.l.bf16 %v2859_v21 }
 0x358   : > { %2667 = vmatpush3.bf16.msra.mxu0 %v2664_v5 }
 0x359   : > { %v2678_v47 = vpack.c.bf16 %v2861_v41, %v2860_v42 }
 0x35c   : > { %2534 = vmatmul.mubr.msk.f32.vlgmr.msra.gmra.mrb[4].mxu1 %vm361_vm1, %v795_v6 }
 0x41f   : > { %v3439_v7 = vpop.f32.mrb[0].mxu1 }
 0x420   : > { %v3441_v8 = vpop.f32.mrb[1].mxu1 }
 0x427   : > { %v2521_v9 = vpop.f32.mrb[2].mxu1 }
 0x428   : > { %v657_v10 = vmul.f32 0.35355338, %v2521_v9  ;;  %v647_v11 = vpop.f32.mrb[3].mxu1 }
 0x429   : > { %v656_v12 = vmul.f32 0.35355338, %v647_v11 }
 0x42a   : > { %v661_v13 = vsel %vm447_vm3, %v657_v10, -inf }
 0x42b   : > { %662 = vmax.xlane.f32.xlu0 %v661_v13  ;;  %v658_v14 = vsel %vm447_vm3, %v656_v12, -inf }
 0x42c   : > { %659 = vmax.xlane.f32.xlu1 %v658_v14 }
 0x42f   : > { %v2535_v15 = vpop.f32.mrb[4].mxu1 }
 0x430   : > { %v884_v16 = vmul.f32 0.35355338, %v2535_v15  ;;  %v874_v17 = vpop.f32.mrb[5].mxu1 }
 0x431   : > { %v883_v18 = vmul.f32 0.35355338, %v874_v17 }
 0x432   : > { %v888_v19 = vsel %vm447_vm3, %v884_v16, -inf }
 0x433   : > { %889 = vmax.xlane.f32.xlu1 %v888_v19  ;;  %v885_v20 = vsel %vm447_vm3, %v883_v18, -inf }
 0x437   : > { %886 = vmax.xlane.f32.xlu1 %v885_v20 }
 0x441   : > { %2853 = vrot.lane.b32.xlu0 %v3390_v35, %s3140_s8  ;;  %s244_s8 = scalar_lea.vmem [#allocation10], %s2363_s13  ;;  %s2249_s13 = scalar_lea.sflag [#allocation6], %s3357_s10 }
 0x448   : > { %1019 = vrot.lane.b32.xlu1 %v3377_v27, %s3143_s9 }
 0x44c   : > { %1021 = vrot.lane.b32.xlu1 %v3382_v29, %s3143_s9 }
 0x4b8   : > { %v663_v22 = vpop.xlane.xlu0 %662 }
 0x4b9   : > { %v665_v23 = vsub.f32 %v657_v10, %v663_v22  ;;  %v660_v24 = vpop.xlane.xlu1 %659 }
 0x4ba   : > { %v664_v25 = vsub.f32 %v656_v12, %v660_v24 }
 0x4bb   : > { %v668_v26 = vmul.f32 1.442695, %v665_v23 }
 0x4bc   : > { %v666_v28 = vmul.f32 1.442695, %v664_v25  ;;  %v2854_v30 = vpop.permute.xlu0 %2853 }
 0x4bd   : > { %v2856_v32 = vunpack.i.h.bf16 %v2854_v30  ;;  %v2855_v33 = vunpack.i.l.bf16 %v2854_v30 }
 0x4be   : > { %2911 = vpow2.f32 %v666_v28 }
 0x4bf   : > { %2913 = vpow2.f32 %v668_v26  ;;  %v2674_v34 = vpack.c.bf16 %v2856_v32, %v2855_v33 }
 0x4c0   : > { %v890_v36 = vpop.xlane.xlu1 %889 }
 0x4c1   : > { %2675 = vmatprep.subr.bf16.mxu0 %v2674_v34  ;;  %v892_v37 = vsub.f32 %v884_v16, %v890_v36 }
 0x4c3   : > { %v895_v43 = vmul.f32 1.442695, %v892_v37 }
 0x4c4   : > { %v887_v38 = vpop.xlane.xlu1 %886 }
 0x4c5   : > { %v891_v40 = vsub.f32 %v883_v18, %v887_v38 }
 0x4c7   : > { %v893_v44 = vmul.f32 1.442695, %v891_v40 }
 0x4c8   : > { %v3453_v45 = vpop.eup %2911  ;;  %v1020_v50 = vpop.permute.xlu1 %1019 }
 0x4c9   : > { %v3455_v46 = vpop.eup %2913  ;;  %2915 = vpow2.f32 %v893_v44  ;;  %2526 = vmatprep.mubr.msk.f32.mxu0 %vm447_vm3, %v3453_v45  ;;  %v670_v39 = vsel %vm447_vm3, %v3453_v45, 0.0 }
 0x4ca   : > { %2917 = vpow2.f32 %v895_v43  ;;  %2527 = vmatmul.mubr.msk.f32.vlgmr.msra.gmra.mrb[6].mxu0 %vm447_vm3, %v3455_v46 }
 0x4cb   : > { %2677 = vmatpush3.bf16.msra.mxu0 %v2674_v34 }
 0x4cc   : > { %2680 = vmatprep.subr.msk.bf16.mxu0 %vm3394_vm2, %v2678_v47  ;;  %v1022_v51 = vpop.permute.xlu1 %1021 }
 0x4d3   : > { %v3463_v48 = vpop.eup %2915 }
 0x4d4   : > { %v3465_v49 = vpop.eup %2917  ;;  %2540 = vmatprep.mubr.msk.f32.mxu0 %vm447_vm3, %v3463_v48 }
 0x4d5   : > { %2541 = vmatmul.mubr.msk.f32.vlgmr.msra.gmra.mrb[8].mxu0 %vm447_vm3, %v3465_v49 }
 0x4d6   : > { %2683 = vmatpush3.bf16.xpose.msk.msra.mxu0 %vm3394_vm2, %v2678_v47  ;;  %2547 = vmatprep.mubr.msk.f32.mxu0 %vm361_vm1, %v1020_v50 }
 0x4dd   : > { %2548 = vmatmul.mubr.msk.f32.vlgmr.msra.gmra.mrb[10].mxu0 %vm361_vm1, %v1022_v51 }
 0x59d   : > { %v3475_v52 = vpop.f32.mrb[6].mxu0 }
 0x59e   : > { %v3477_v53 = vpop.f32.mrb[7].mxu0 }
 0x5a8   : > { %v3479_v54 = vpop.f32.mrb[8].mxu0 }
 0x5a9   : > { %v3481_v55 = vpop.f32.mrb[9].mxu0 }
 0x5b0   : > { %v2549_v56 = vpop.f32.mrb[10].mxu0 }
 0x5b1   : > { %v1111_v57 = vmul.f32 0.35355338, %v2549_v56  ;;  %v1101_v58 = vpop.f32.mrb[11].mxu0 }
 0x5b2   : > { %v1110_v59 = vmul.f32 0.35355338, %v1101_v58 }
 0x5b3   : > { %v1115_v60 = vsel %vm447_vm3, %v1111_v57, -inf }
 0x5b4   : > { %1116 = vmax.xlane.f32.xlu1 %v1115_v60  ;;  %v1112_v62 = vsel %vm447_vm3, %v1110_v59, -inf }
 0x5b5   : > { %1113 = vmax.xlane.f32.xlu0 %v1112_v62 }
 0x5c5   : > { %2868 = vrot.lane.b32.xlu1 %v3386_v31, %s3144_s28 }
 0x5c9   : > { %1248 = vrot.lane.b32.xlu1 %v3382_v29, %s3145_s27 }
 0x5cb   : > { %2863 = vrot.lane.b32.xlu0 %v3390_v35, %s3143_s9 }
 0x5cf   : > { %1246 = vrot.lane.b32.xlu0 %v3377_v27, %s3145_s27 }
 0x641   : > { %v1117_v0 = vpop.xlane.xlu1 %1116 }
 0x642   : > { %v1119_v1 = vsub.f32 %v1111_v57, %v1117_v0  ;;  %v1114_v2 = vpop.xlane.xlu0 %1113 }
 0x643   : > { %v1118_v3 = vsub.f32 %v1110_v59, %v1114_v2 }
 0x644   : > { %v1122_v4 = vmul.f32 1.442695, %v1119_v1 }
 0x645   : > { %v1120_v5 = vmul.f32 1.442695, %v1118_v3  ;;  %v2869_v6 = vpop.permute.xlu1 %2868 }
 0x646   : > { %v2871_v9 = vunpack.i.h.bf16 %v2869_v6  ;;  %v2864_v10 = vpop.permute.xlu0 %2863  ;;  %v2870_v11 = vunpack.i.l.bf16 %v2869_v6 }
 0x647   : > { %2919 = vpow2.f32 %v1120_v5  ;;  %v2866_v12 = vunpack.i.h.bf16 %v2864_v10  ;;  %v2865_v13 = vunpack.i.l.bf16 %v2864_v10 }
 0x648   : > { %2921 = vpow2.f32 %v1122_v4  ;;  %v2688_v15 = vpack.c.bf16 %v2871_v9, %v2870_v11 }
 0x649   : > { %v2684_v14 = vpack.c.bf16 %v2866_v12, %v2865_v13  ;;  %v1249_v19 = vpop.permute.xlu1 %1248 }
 0x64a   : > { %v1247_v18 = vpop.permute.xlu0 %1246 }
 0x64b   : > { %2685 = vmatprep.subr.bf16.mxu1 %v2684_v14 }
 0x64c   : > { %2687 = vmatpush3.bf16.msra.mxu1 %v2684_v14 }
 0x64d   : > { %2690 = vmatprep.subr.msk.bf16.mxu1 %vm3394_vm2, %v2688_v15 }
 0x651   : > { %v3495_v16 = vpop.eup %2919 }
 0x652   : > { %v3497_v17 = vpop.eup %2921  ;;  %2554 = vmatprep.mubr.msk.f32.mxu1 %vm447_vm3, %v3495_v16 }
 0x653   : > { %2555 = vmatmul.mubr.msk.f32.vlgmr.msra.gmra.mrb[6].mxu1 %vm447_vm3, %v3497_v17 }
 0x654   : > { %2561 = vmatprep.mubr.msk.f32.mxu1 %vm361_vm1, %v1247_v18 }
 0x655   : > { %2693 = vmatpush3.bf16.xpose.msk.msra.mxu1 %vm3394_vm2, %v2688_v15 }
 0x65c   : > { %2562 = vmatmul.mubr.msk.f32.vlgmr.msra.gmra.mrb[8].mxu1 %vm361_vm1, %v1249_v19 }
 0x726   : > { %v3507_v20 = vpop.f32.mrb[6].mxu1 }
 0x727   : > { %v3509_v21 = vpop.f32.mrb[7].mxu1 }
 0x72f   : > { %v2563_v22 = vpop.f32.mrb[8].mxu1 }
 0x730   : > { %v1338_v23 = vmul.f32 0.35355338, %v2563_v22  ;;  %v1328_v24 = vpop.f32.mrb[9].mxu1 }
 0x731   : > { %v1337_v25 = vmul.f32 0.35355338, %v1328_v24 }
 0x732   : > { %v1342_v26 = vsel %vm447_vm3, %v1338_v23, -inf }
 0x733   : > { %1343 = vmax.xlane.f32.xlu1 %v1342_v26  ;;  %v1339_v28 = vsel %vm447_vm3, %v1337_v25, -inf }
 0x734   : > { %1340 = vmax.xlane.f32.xlu0 %v1339_v28 }
 0x744   : > { %2878 = vrot.lane.b32.xlu1 %v3386_v31, %s3146_s20 }
 0x748   : > { %1475 = vrot.lane.b32.xlu1 %v3382_v29, %s3147_s29 }
 0x74a   : > { %2873 = vrot.lane.b32.xlu0 %v3390_v35, %s3145_s27  ;;  %s3152_s27 = smov [#allocation10]  }
 0x74e   : > { %1473 = vrot.lane.b32.xlu0 %v3377_v27, %s3147_s29 }
 0x7c0   : > { %v1344_v30 = vpop.xlane.xlu1 %1343 }
 0x7c1   : > { %v1346_v32 = vsub.f32 %v1338_v23, %v1344_v30  ;;  %v1341_v33 = vpop.xlane.xlu0 %1340 }
 0x7c2   : > { %v1345_v34 = vsub.f32 %v1337_v25, %v1341_v33 }
 0x7c3   : > { %v1349_v36 = vmul.f32 1.442695, %v1346_v32 }
 0x7c4   : > { %v1347_v37 = vmul.f32 1.442695, %v1345_v34  ;;  %v2879_v38 = vpop.permute.xlu1 %2878 }
 0x7c5   : > { %v2881_v40 = vunpack.i.h.bf16 %v2879_v38  ;;  %v2874_v41 = vpop.permute.xlu0 %2873  ;;  %v2880_v42 = vunpack.i.l.bf16 %v2879_v38 }
 0x7c6   : > { %2923 = vpow2.f32 %v1347_v37  ;;  %v2876_v43 = vunpack.i.h.bf16 %v2874_v41  ;;  %v2875_v44 = vunpack.i.l.bf16 %v2874_v41 }
 0x7c7   : > { %2925 = vpow2.f32 %v1349_v36  ;;  %v2698_v50 = vpack.c.bf16 %v2881_v40, %v2880_v42 }
 0x7c8   : > { %v2694_v47 = vpack.c.bf16 %v2876_v43, %v2875_v44  ;;  %v1476_v58 = vpop.permute.xlu1 %1475 }
 0x7c9   : > { %v1474_v57 = vpop.permute.xlu0 %1473 }
 0x7ca   : > { %2695 = vmatprep.subr.bf16.mxu0 %v2694_v47 }
 0x7cb   : > { %2697 = vmatpush3.bf16.msra.mxu0 %v2694_v47 }
 0x7cc   : > { %2700 = vmatprep.subr.msk.bf16.mxu0 %vm3394_vm2, %v2698_v50 }
 0x7d0   : > { %v3523_v51 = vpop.eup %2923 }
 0x7d1   : > { %v3525_v56 = vpop.eup %2925  ;;  %2568 = vmatprep.mubr.msk.f32.mxu0 %vm447_vm3, %v3523_v51  ;;  %v1351_v45 = vsel %vm447_vm3, %v3523_v51, 0.0  ;;  %v1127_v51 = vsel %vm447_vm3, %v3497_v17, 0.0 }
 0x7d2   : > { %2569 = vmatmul.mubr.msk.f32.vlgmr.msra.gmra.mrb[12].mxu0 %vm447_vm3, %v3525_v56 }
 0x7d3   : > { %2575 = vmatprep.mubr.msk.f32.mxu0 %vm361_vm1, %v1474_v57 }
 0x7d4   : > { %2703 = vmatpush3.bf16.xpose.msk.msra.mxu0 %vm3394_vm2, %v2698_v50 }
 0x7db   : > { %2576 = vmatmul.mubr.msk.f32.vlgmr.msra.gmra.mrb[14].mxu0 %vm361_vm1, %v1476_v58 }
 0x8a5   : > { %v3535_v59 = vpop.f32.mrb[12].mxu0 }
 0x8a6   : > { %v3537_v60 = vpop.f32.mrb[13].mxu0 }
 0x8ae   : > { %v2577_v62 = vpop.f32.mrb[14].mxu0 }
 0x8af   : > { %v1565_v0 = vmul.f32 0.35355338, %v2577_v62  ;;  %v1555_v1 = vpop.f32.mrb[15].mxu0 }
 0x8b0   : > { %v1564_v2 = vmul.f32 0.35355338, %v1555_v1 }
 0x8b1   : > { %v1569_v3 = vsel %vm447_vm3, %v1565_v0, -inf }
 0x8b2   : > { %1570 = vmax.xlane.f32.xlu1 %v1569_v3  ;;  %v1566_v4 = vsel %vm447_vm3, %v1564_v2, -inf }
 0x8b3   : > { %1567 = vmax.xlane.f32.xlu0 %v1566_v4 }
 0x8c3   : > { %2888 = vrot.lane.b32.xlu1 %v3386_v31, %s3148_s5 }
 0x8c7   : > { %1702 = vrot.lane.b32.xlu1 %v3382_v29, %s3149_s12 }
 0x8c9   : > { %2883 = vrot.lane.b32.xlu0 %v3390_v35, %s3147_s29 }
 0x8cd   : > { %1700 = vrot.lane.b32.xlu0 %v3377_v27, %s3149_s12 }
 0x93f   : > { %v1571_v5 = vpop.xlane.xlu1 %1570 }
 0x940   : > { %v1573_v6 = vsub.f32 %v1565_v0, %v1571_v5  ;;  %v1568_v9 = vpop.xlane.xlu0 %1567 }
 0x941   : > { %v1572_v10 = vsub.f32 %v1564_v2, %v1568_v9 }
 0x942   : > { %v1576_v11 = vmul.f32 1.442695, %v1573_v6 }
 0x943   : > { %v1574_v12 = vmul.f32 1.442695, %v1572_v10  ;;  %v2889_v13 = vpop.permute.xlu1 %2888 }
 0x944   : > { %v2891_v14 = vunpack.i.h.bf16 %v2889_v13  ;;  %v2884_v15 = vpop.permute.xlu0 %2883  ;;  %v2890_v18 = vunpack.i.l.bf16 %v2889_v13 }
 0x945   : > { %2927 = vpow2.f32 %v1574_v12  ;;  %v2886_v19 = vunpack.i.h.bf16 %v2884_v15  ;;  %v2885_v22 = vunpack.i.l.bf16 %v2884_v15 }
 0x946   : > { %2929 = vpow2.f32 %v1576_v11  ;;  %v2708_v24 = vpack.c.bf16 %v2891_v14, %v2890_v18 }
 0x947   : > { %v2704_v23 = vpack.c.bf16 %v2886_v19, %v2885_v22  ;;  %v1703_v30 = vpop.permute.xlu1 %1702  ;;  %v673_v19 = vsel %vm447_vm3, %v3455_v46, 0.0  ;;  %v897_v22 = vsel %vm447_vm3, %v3463_v48, 0.0  ;;  %v1354_v46 = vsel %vm447_vm3, %v3525_v56, 0.0 }
 0x948   : > { %v1701_v28 = vpop.permute.xlu0 %1700 }
 0x949   : > { %2705 = vmatprep.subr.bf16.mxu1 %v2704_v23 }
 0x94a   : > { %2707 = vmatpush3.bf16.msra.mxu1 %v2704_v23  ;;  %v900_v23 = vsel %vm447_vm3, %v3465_v49, 0.0 }
 0x94b   : > { %2710 = vmatprep.subr.msk.bf16.mxu1 %vm3394_vm2, %v2708_v24 }
 0x94f   : > { %v3551_v25 = vpop.eup %2927 }
 0x950   : > { %v3553_v26 = vpop.eup %2929  ;;  %2582 = vmatprep.mubr.msk.f32.mxu1 %vm447_vm3, %v3551_v25  ;;  %v1578_v48 = vsel %vm447_vm3, %v3551_v25, 0.0 }
 0x951   : > { %2583 = vmatmul.mubr.msk.f32.vlgmr.msra.gmra.mrb[10].mxu1 %vm447_vm3, %v3553_v26  ;;  %v1581_v49 = vsel %vm447_vm3, %v3553_v26, 0.0 }
 0x952   : > { %2589 = vmatprep.mubr.msk.f32.mxu1 %vm361_vm1, %v1701_v28 }
 0x953   : > { %2713 = vmatpush3.bf16.xpose.msk.msra.mxu1 %vm3394_vm2, %v2708_v24  ;;  %v1124_v24 = vsel %vm447_vm3, %v3495_v16, 0.0 }
 0x95a   : > { %2590 = vmatmul.mubr.msk.f32.vlgmr.msra.gmra.mrb[12].mxu1 %vm361_vm1, %v1703_v30 }
 0xa24   : > { %v3563_v32 = vpop.f32.mrb[10].mxu1 }
 0xa25   : > { %v3565_v33 = vpop.f32.mrb[11].mxu1 }
 0xa2d   : > { %v2591_v34 = vpop.f32.mrb[12].mxu1 }
 0xa2e   : > { %v1792_v36 = vmul.f32 0.35355338, %v2591_v34  ;;  %v1782_v37 = vpop.f32.mrb[13].mxu1 }
 0xa2f   : > { %v1791_v38 = vmul.f32 0.35355338, %v1782_v37 }
 0xa30   : > { %v1796_v40 = vsel %vm447_vm3, %v1792_v36, -inf }
 0xa31   : > { %1797 = vmax.xlane.f32.xlu1 %v1796_v40  ;;  %v1793_v41 = vsel %vm447_vm3, %v1791_v38, -inf }
 0xa32   : > { %1794 = vmax.xlane.f32.xlu0 %v1793_v41 }
 0xa42   : > { %2898 = vrot.lane.b32.xlu1 %v3386_v31, %s3150_s24 }
 0xa46   : > { %1929 = vrot.lane.b32.xlu1 %v3382_v29, %s3151_s25 }
 0xa48   : > { %2893 = vrot.lane.b32.xlu0 %v3390_v35, %s3149_s12 }
 0xa4c   : > { %1927 = vrot.lane.b32.xlu0 %v3377_v27, %s3151_s25 }
 0xabe   : > { %v1798_v42 = vpop.xlane.xlu1 %1797 }
 0xabf   : > { %v1800_v43 = vsub.f32 %v1792_v36, %v1798_v42  ;;  %v1795_v44 = vpop.xlane.xlu0 %1794 }
 0xac0   : > { %v1799_v47 = vsub.f32 %v1791_v38, %v1795_v44 }
 0xac1   : > { %v1803_v50 = vmul.f32 1.442695, %v1800_v43 }
 0xac2   : > { %v1801_v57 = vmul.f32 1.442695, %v1799_v47  ;;  %v2899_v58 = vpop.permute.xlu1 %2898 }
 0xac3   : > { %v2901_v62 = vunpack.i.h.bf16 %v2899_v58  ;;  %v2894_v0 = vpop.permute.xlu0 %2893  ;;  %v2900_v31 = vunpack.i.l.bf16 %v2899_v58 }
 0xac4   : > { %2931 = vpow2.f32 %v1801_v57  ;;  %v2896_v1 = vunpack.i.h.bf16 %v2894_v0  ;;  %v2895_v2 = vunpack.i.l.bf16 %v2894_v0  ;;  %v460_v0 = vsel %vm447_vm3, %v3421_v61, 0.0 }
 0xac5   : > { %2933 = vpow2.f32 %v1803_v50  ;;  %v2718_v3 = vpack.c.bf16 %v2901_v62, %v2900_v31  ;;  %v463_v62 = vsel %vm447_vm3, %v3423_v63, 0.0 }
 0xac6   : > { %v2714_v29 = vpack.c.bf16 %v2896_v1, %v2895_v2  ;;  %v1930_v6 = vpop.permute.xlu1 %1929 }
 0xac7   : > { %v1928_v5 = vpop.permute.xlu0 %1927 }
 0xac8   : > { %2715 = vmatprep.subr.bf16.mxu0 %v2714_v29 }
 0xac9   : > { %2717 = vmatpush3.bf16.msra.mxu0 %v2714_v29 }
 0xaca   : > { %2720 = vmatprep.subr.msk.bf16.mxu0 %vm3394_vm2, %v2718_v3 }
 0xace   : > { %v2932_v27 = vpop.eup %2931 }
 0xacf   : > { %v2934_v4 = vpop.eup %2933  ;;  %2596 = vmatprep.mubr.msk.f32.mxu0 %vm447_vm3, %v2932_v27  ;;  %v1805_v16 = vsel %vm447_vm3, %v2932_v27, 0.0 }
 0xad0   : > { %2597 = vmatmul.mubr.msk.f32.vlgmr.msra.gmra.mrb[16].mxu0 %vm447_vm3, %v2934_v4 }
 0xad1   : > { %2603 = vmatprep.mubr.msk.f32.mxu0 %vm361_vm1, %v1928_v5 }
 0xad2   : > { %2723 = vmatpush3.bf16.xpose.msk.msra.mxu0 %vm3394_vm2, %v2718_v3 }
 0xad9   : > { %2604 = vmatmul.mubr.msk.f32.vlgmr.msra.gmra.mrb[18].mxu0 %vm361_vm1, %v1930_v6 }
 0xba3   : > { %v3585_v9 = vpop.f32.mrb[16].mxu0 }
 0xba4   : > { %v3587_v10 = vpop.f32.mrb[17].mxu0 }
 0xbac   : > { %v2605_v11 = vpop.f32.mrb[18].mxu0 }
 0xbad   : > { %v2019_v12 = vmul.f32 0.35355338, %v2605_v11  ;;  %v2009_v13 = vpop.f32.mrb[19].mxu0 }
 0xbae   : > { %v2018_v14 = vmul.f32 0.35355338, %v2009_v13 }
 0xbaf   : > { %v2023_v15 = vsel %vm447_vm3, %v2019_v12, -inf }
 0xbb0   : > { %2024 = vmax.xlane.f32.xlu1 %v2023_v15  ;;  %v2020_v18 = vsel %vm447_vm3, %v2018_v14, -inf }
 0xbb1   : > { %2021 = vmax.xlane.f32.xlu0 %v2020_v18 }
 0xbb4   : > { %671 = vadd.xlane.f32.xlu1 %v670_v39 }
 0xbb8   : > { %674 = vadd.xlane.f32.xlu1 %v673_v19 }
 0xbbc   : > { %898 = vadd.xlane.f32.xlu1 %v897_v22 }
 0xbc0   : > { %901 = vadd.xlane.f32.xlu1 %v900_v23 }
 0xbc4   : > { %1125 = vadd.xlane.f32.xlu1 %v1124_v24 }
 0xbc7   : > { %2903 = vrot.lane.b32.xlu0 %v3390_v35, %s3151_s25  ;;  %v1808_v35 = vsel %vm447_vm3, %v2934_v4, 0.0 }
 0xbc8   : > { %1352 = vadd.xlane.f32.xlu1 %v1351_v45 }
 0xbcc   : > { %1355 = vadd.xlane.f32.xlu1 %v1354_v46 }
 0xbd0   : > { %1579 = vadd.xlane.f32.xlu1 %v1578_v48 }
 0xbd4   : > { %1582 = vadd.xlane.f32.xlu1 %v1581_v49 }
 0xbd8   : > { %1806 = vadd.xlane.f32.xlu1 %v1805_v16 }
 0xbdc   : > { %1809 = vadd.xlane.f32.xlu1 %v1808_v35 }
 0xbe6   : > { %1128 = vadd.xlane.f32.xlu0 %v1127_v51 }
 0xc3d   : > { %v2025_v56 = vpop.xlane.xlu1 %2024 }
 0xc3e   : > { %v2027_v28 = vsub.f32 %v2019_v12, %v2025_v56  ;;  %v2022_v30 = vpop.xlane.xlu0 %2021 }
 0xc3f   : > { %v2026_v34 = vsub.f32 %v2018_v14, %v2022_v30 }
 0xc40   : > { %v2030_v25 = vmul.f32 1.442695, %v2027_v28 }
 0xc41   : > { %v2028_v36 = vmul.f32 1.442695, %v2026_v34  ;;  %v672_v37 = vpop.xlane.xlu1 %671 }
 0xc42   : > { %2935 = vpow2.f32 %v2030_v25  ;;  %v2904_v26 = vpop.permute.xlu0 %2903 }
 0xc43   : > { %2937 = vpow2.f32 %v2028_v36  ;;  %v2906_v38 = vunpack.i.h.bf16 %v2904_v26  ;;  %v2905_v40 = vunpack.i.l.bf16 %v2904_v26 }
 0xc44   : > { %2939 = vrcp.f32 %v672_v37 }
 0xc45   : > { %v2724_v41 = vpack.c.bf16 %v2906_v38, %v2905_v40  ;;  %v675_v42 = vpop.xlane.xlu1 %674 }
 0xc46   : > { %2941 = vrcp.f32 %v675_v42 }
 0xc47   : > { %2725 = vmatprep.subr.bf16.mxu1 %v2724_v41 }
 0xc48   : > { %2727 = vmatpush3.bf16.msra.mxu1 %v2724_v41 }
 0xc49   : > { %v899_v43 = vpop.xlane.xlu1 %898 }
 0xc4a   : > { %2943 = vrcp.f32 %v899_v43 }
 0xc4c   : > { %v2936_v17 = vpop.eup %2935 }
 0xc4d   : > { %v2938_v44 = vpop.eup %2937  ;;  %v902_v47 = vpop.xlane.xlu1 %901  ;;  %v2035_v50 = vsel %vm447_vm3, %v2936_v17, 0.0 }
 0xc4e   : > { %2036 = vadd.xlane.f32.xlu0 %v2035_v50  ;;  %2610 = vmatprep.mubr.msk.f32.mxu1 %vm447_vm3, %v2938_v44  ;;  %v2032_v57 = vsel %vm447_vm3, %v2938_v44, 0.0  ;;  %2945 = vrcp.f32 %v902_v47  ;;  %v2940_v31 = vpop.eup %2939 }
 0xc4f   : > { %2033 = vadd.xlane.f32.xlu1 %v2032_v57  ;;  %2611 = vmatmul.mubr.msk.f32.vlgmr.msra.gmra.mrb[14].mxu1 %vm447_vm3, %v2936_v17  ;;  %v767_v3 = vmul.f32 %v2940_v31, %v672_v37 }
 0xc50   : > { %v2942_v1 = vpop.eup %2941 }
 0xc51   : > { %v1126_v58 = vpop.xlane.xlu1 %1125  ;;  %v768_v27 = vmul.f32 %v2942_v1, %v675_v42  ;;  %v769_v6 = vsub.f32 2.0, %v767_v3 }
 0xc52   : > { %464 = vadd.xlane.f32.xlu0 %v463_v62  ;;  %2947 = vrcp.f32 %v1126_v58 }
 0xc53   : > { %461 = vadd.xlane.f32.xlu1 %v460_v0  ;;  %v770_v12 = vsub.f32 2.0, %v768_v27  ;;  %v771_v14 = vmul.f32 %v2940_v31, %v769_v6 }
 0xc54   : > { %v2944_v29 = vpop.eup %2943 }
 0xc55   : > { %v1353_v2 = vpop.xlane.xlu1 %1352  ;;  %v994_v4 = vmul.f32 %v2944_v29, %v899_v43  ;;  %v772_v18 = vmul.f32 %v2942_v1, %v770_v12  ;;  %v773_v24 = vmul.f32 %v771_v14, %v3477_v53  ;;  %v2151_v12 = vld [vmem:[#allocation9 + $0x8] sm:$0xff] }
 0xc56   : > { %2949 = vrcp.f32 %v1353_v2 }
 0xc57   : > { %v996_v13 = vsub.f32 2.0, %v994_v4  ;;  %v774_v48 = vmul.f32 %v3475_v52, %v772_v18 }
 0xc58   : > { %v2946_v11 = vpop.eup %2945 }
 0xc59   : > { %v1356_v5 = vpop.xlane.xlu1 %1355  ;;  %v995_v15 = vmul.f32 %v2946_v11, %v902_v47  ;;  %v998_v39 = vmul.f32 %v2944_v29, %v996_v13 }
 0xc5b   : > { %v997_v22 = vsub.f32 2.0, %v995_v15  ;;  %v1000_v49 = vmul.f32 %v998_v39, %v3481_v55 }
 0xc5c   : > { %v2948_v61 = vpop.eup %2947 }
 0xc5d   : > { %v1580_v63 = vpop.xlane.xlu1 %1579  ;;  %v1221_v23 = vmul.f32 %v2948_v61, %v1126_v58  ;;  %v999_v16 = vmul.f32 %v2946_v11, %v997_v22  ;;  %v2150_v11 = vld [vmem:[#allocation9] sm:$0xff] }
 0xc5e   : > { %2951 = vrcp.f32 %v1580_v63  ;;  %v2728_v13 = vpack.c.bf16 %v2151_v12, %v2150_v11 }
 0xc5f   : > { %v1223_v35 = vsub.f32 2.0, %v1221_v23  ;;  %v1001_v34 = vmul.f32 %v3479_v54, %v999_v16 }
 0xc60   : > { %v2950_v45 = vpop.eup %2949  ;;  %2729 = vmatprep.subr.bf16.mxu1 %v2728_v13 }
 0xc61   : > { %v1583_v19 = vpop.xlane.xlu1 %1582  ;;  %v1448_v51 = vmul.f32 %v2950_v45, %v1353_v2  ;;  %v1225_v28 = vmul.f32 %v2948_v61, %v1223_v35  ;;  %2731 = vmatpush3.bf16.msra.mxu1 %v2728_v13 }
 0xc63   : > { %v1450_v30 = vsub.f32 2.0, %v1448_v51  ;;  %v1227_v55 = vmul.f32 %v1225_v28, %v3509_v21 }
 0xc64   : > { %777 = vrot.lane.b32.xlu1 %v773_v24, %s3150_s24 }
 0xc65   : > { %v1807_v46 = vpop.xlane.xlu1 %1806  ;;  %v1452_v25 = vmul.f32 %v2950_v45, %v1450_v30 }
 0xc66   : > { %2953 = vrcp.f32 %v1807_v46 }
 0xc67   : > { %2955 = vrcp.f32 %v1356_v5  ;;  %v1454_v38 = vmul.f32 %v1452_v25, %v3537_v60 }
 0xc68   : > { %v2952_v56 = vpop.eup %2951  ;;  %779 = vrot.lane.b32.xlu0 %v774_v48, %s3150_s24  ;;  %1004 = vrot.lane.b32.xlu1 %v1000_v49, %s3148_s5  ;;  %2957 = vrcp.f32 %v1583_v19 }
 0xc69   : > { %v1675_v53 = vmul.f32 %v2952_v56, %v1580_v63  ;;  %v1810_v54 = vpop.xlane.xlu1 %1809  ;;  %v2153_v63 = vld [vmem:[#allocation9 + $0x18] sm:$0xff] }
 0xc6b   : > { %v1677_v52 = vsub.f32 2.0, %v1675_v53 }
 0xc6c   : > { %1006 = vrot.lane.b32.xlu1 %v1001_v34, %s3148_s5 }
 0xc6d   : > { %v1679_v26 = vmul.f32 %v2952_v56, %v1677_v52 }
 0xc6f   : > { %v1681_v43 = vmul.f32 %v1679_v26, %v3565_v33  ;;  %v2155_v26 = vld [vmem:[#allocation9 + $0x28] sm:$0xff] }
 0xc70   : > { %v2954_v36 = vpop.eup %2953  ;;  %1231 = vrot.lane.b32.xlu1 %v1227_v55, %s3146_s20 }
 0xc71   : > { %v1902_v37 = vmul.f32 %v2954_v36, %v1807_v46  ;;  %v2956_v21 = vpop.eup %2955 }
 0xc72   : > { %v2958_v44 = vpop.eup %2957  ;;  %v1449_v60 = vmul.f32 %v2956_v21, %v1356_v5 }
 0xc73   : > { %v1904_v40 = vsub.f32 2.0, %v1902_v37  ;;  %v1129_v41 = vpop.xlane.xlu0 %1128  ;;  %v1676_v58 = vmul.f32 %v2958_v44, %v1583_v19  ;;  %v2154_v37 = vld [vmem:[#allocation9 + $0x20] sm:$0xff] }
 0xc74   : > { %2959 = vrcp.f32 %v1129_v41  ;;  %1458 = vrot.lane.b32.xlu1 %v1454_v38, %s3144_s28  ;;  %v1451_v57 = vsub.f32 2.0, %v1449_v60  ;;  %v2156_v38 = vld [vmem:[#allocation9 + $0x30] sm:$0xff] }
 0xc75   : > { %v1906_v42 = vmul.f32 %v2954_v36, %v1904_v40  ;;  %2961 = vrcp.f32 %v1810_v54  ;;  %v1678_v2 = vsub.f32 2.0, %v1676_v58 }
 0xc76   : > { %v1453_v1 = vmul.f32 %v2956_v21, %v1451_v57 }
 0xc77   : > { %v1908_v17 = vmul.f32 %v1906_v42, %v3587_v10  ;;  %v1680_v3 = vmul.f32 %v2958_v44, %v1678_v2 }
 0xc78   : > { %1685 = vrot.lane.b32.xlu1 %v1681_v43, %s3142_s6  ;;  %v1455_v27 = vmul.f32 %v3535_v59, %v1453_v1  ;;  %v2417_v1 = vld [vmem:[%s3716_s3] ss:$0 sm:$0xff] }
 0xc79   : > { %v1682_v5 = vmul.f32 %v3563_v32, %v1680_v3 }
 0xc7c   : > { %1912 = vrot.lane.b32.xlu1 %v1908_v17, %s3141_s30 }
 0xc7e   : > { %v2960_v47 = vpop.eup %2959 }
 0xc7f   : > { %v1222_v50 = vmul.f32 %v2960_v47, %v1129_v41  ;;  %v2962_v0 = vpop.eup %2961  ;;  %v2736_v41 = vpack.c.bf16 %v2155_v26, %v2154_v37 }
 0xc80   : > { %v1903_v33 = vmul.f32 %v2962_v0, %v1810_v54  ;;  %v2157_v54 = vld [vmem:[#allocation9 + $0x38] sm:$0xff] }
 0xc81   : > { %v1224_v62 = vsub.f32 2.0, %v1222_v50  ;;  %v2740_v42 = vpack.c.bf16 %v2157_v54, %v2156_v38 }
 0xc82   : > { %v1905_v10 = vsub.f32 2.0, %v1903_v33 }
 0xc83   : > { %v1226_v31 = vmul.f32 %v2960_v47, %v1224_v62 }
 0xc84   : > { %v1907_v4 = vmul.f32 %v2962_v0, %v1905_v10 }
 0xc85   : > { %v1228_v29 = vmul.f32 %v3507_v20, %v1226_v31  ;;  %v2152_v20 = vld [vmem:[#allocation9 + $0x10] sm:$0xff] }
 0xc86   : > { %v1909_v6 = vmul.f32 %v3585_v9, %v1907_v4  ;;  %v2732_v14 = vpack.c.bf16 %v2153_v63, %v2152_v20 }
 0xc87   : > { %1233 = vrot.lane.b32.xlu0 %v1228_v29, %s3146_s20  ;;  %s3061_s20 = sshll.u32 %s3152_s27, 4  ;;  %s3062_s20 = int_to_ptr.vmem [resolvable:$false] %s3061_s20 }
 0xc88   : > { %2733 = vmatprep.subr.bf16.mxu1 %v2732_v14  ;;  %s3063_s29 = scalar_lea.vmem %s3062_s20, 512 }
 0xc89   : > { %2735 = vmatpush3.bf16.msra.mxu1 %v2732_v14 }
 0xc8a   : > { %2737 = vmatprep.subr.bf16.mxu1 %v2736_v41 }
 0xc8b   : > { %1460 = vrot.lane.b32.xlu0 %v1455_v27, %s3144_s28 }
 0xc8d   : > { %2739 = vmatpush3.bf16.msra.mxu1 %v2736_v41 }
 0xc8e   : > { %2741 = vmatprep.subr.bf16.mxu1 %v2740_v42 }
 0xc8f   : > { %1687 = vrot.lane.b32.xlu0 %v1682_v5, %s3142_s6 }
 0xc91   : > { %2743 = vmatpush3.bf16.msra.mxu1 %v2740_v42 }
 0xc93   : > { %1914 = vrot.lane.b32.xlu0 %v1909_v6, %s3141_s30  ;;  %s2426_s30 = sshll.u32 %s3200_s19, 8 }
 0xc94   : > { %s3666_s28 = scalar_lea.hbm %s3717_s4, %s2426_s30 }
 0xcdb   : > { %v2037_v59 = vpop.xlane.xlu0 %2036 }
 0xcdc   : > { %v2034_v15 = vpop.xlane.xlu1 %2033 }
 0xcdf   : > { %v465_v61 = vpop.xlane.xlu0 %464 }
 0xce0   : > { %2963 = vrcp.f32 %v465_v61  ;;  %v462_v32 = vpop.xlane.xlu1 %461 }
 0xce1   : > { %2965 = vrcp.f32 %v462_v32 }
 0xce2   : > { %2967 = vrcp.f32 %v2037_v59 }
 0xce3   : > { %v780_v56 = vpop.permute.xlu0 %779  ;;  %2969 = vrcp.f32 %v2034_v15 }
 0xce4   : > { %v778_v18 = vpop.permute.xlu1 %777 }
 0xce8   : > { %v1005_v9 = vpop.permute.xlu1 %1004 }
 0xcea   : > { %v2964_v39 = vpop.eup %2963 }
 0xceb   : > { %v2966_v19 = vpop.eup %2965  ;;  %v550_v22 = vmul.f32 %v2964_v39, %v465_v61 }
 0xcec   : > { %v549_v23 = vmul.f32 %v2966_v19, %v462_v32  ;;  %v1007_v24 = vpop.permute.xlu1 %1006  ;;  %v2968_v52 = vpop.eup %2967 }
 0xced   : > { %v552_v45 = vsub.f32 2.0, %v550_v22  ;;  %v2970_v55 = vpop.eup %2969  ;;  %v2130_v36 = vmul.f32 %v2968_v52, %v2037_v59 }
 0xcee   : > { %v551_v46 = vsub.f32 2.0, %v549_v23  ;;  %v2129_v40 = vmul.f32 %v2970_v55, %v2034_v15 }
 0xcef   : > { %v554_v48 = vmul.f32 %v2964_v39, %v552_v45  ;;  %v2132_v43 = vsub.f32 2.0, %v2130_v36 }
 0xcf0   : > { %v553_v49 = vmul.f32 %v2966_v19, %v551_v46  ;;  %v1232_v16 = vpop.permute.xlu1 %1231  ;;  %v2131_v21 = vsub.f32 2.0, %v2129_v40 }
 0xcf1   : > { %v556_v35 = vmul.f32 %v3439_v7, %v554_v48  ;;  %v2134_v17 = vmul.f32 %v2968_v52, %v2132_v43 }
 0xcf2   : > { %v555_v51 = vmul.f32 %v553_v49, %v3441_v8  ;;  %v2133_v60 = vmul.f32 %v2970_v55, %v2131_v21 }
 0xcf3   : > { %558 = vst.msk [vmem:[#allocation3 + $0x8] sm:$0xff] %vm361_vm1, %v556_v35 }
 0xcf4   : > { %557 = vst.msk [vmem:[#allocation3] sm:$0xff] %vm361_vm1, %v555_v51  ;;  %v1459_v28 = vpop.permute.xlu1 %1458 }
 0xcf5   : > { %785 = vst.msk [vmem:[#allocation3 + $0x8] sm:$0xff] %vm783_vm4, %v780_v56  ;;  %784 = vst.msk [vmem:[#allocation3] sm:$0xff] %vm783_vm4, %v778_v18 }
 0xcf6   : > { %1012 = vst.msk [vmem:[#allocation3 + $0x8] sm:$0xff] %vm1010_vm5, %v1007_v24  ;;  %1011 = vst.msk [vmem:[#allocation3] sm:$0xff] %vm1010_vm5, %v1005_v9 }
 0xcf7   : > { %1238 = vst.msk [vmem:[#allocation3] sm:$0xff] %vm1237_vm6, %v1232_v16 }
 0xcf8   : > { %1465 = vst.msk [vmem:[#allocation3] sm:$0xff] %vm1464_vm7, %v1459_v28  ;;  %v1686_v7 = vpop.permute.xlu1 %1685 }
 0xcf9   : > { %1692 = vst.msk [vmem:[#allocation3] sm:$0xff] %vm1691_vm8, %v1686_v7  ;;  %v1234_v30 = vpop.permute.xlu0 %1233 }
 0xcfa   : > { %1239 = vst.msk [vmem:[#allocation3 + $0x8] sm:$0xff] %vm1237_vm6, %v1234_v30 }
 0xcfc   : > { %v1913_v8 = vpop.permute.xlu1 %1912 }
 0xcfd   : > { %1919 = vst.msk [vmem:[#allocation3] sm:$0xff] %vm1918_vm9, %v1913_v8  ;;  %v1461_v53 = vpop.permute.xlu0 %1460 }
 0xcfe   : > { %1466 = vst.msk [vmem:[#allocation3 + $0x8] sm:$0xff] %vm1464_vm7, %v1461_v53 }
 0xd01   : > { %v1688_v34 = vpop.permute.xlu0 %1687 }
 0xd02   : > { %1693 = vst.msk [vmem:[#allocation3 + $0x8] sm:$0xff] %vm1691_vm8, %v1688_v34 }
 0xd05   : > { %v1915_v25 = vpop.permute.xlu0 %1914 }
 0xd06   : > { %1920 = vst.msk [vmem:[#allocation3 + $0x8] sm:$0xff] %vm1918_vm9, %v1915_v25 }
 0xd22   : > { %v2612_v44 = vpop.f32.mrb[14].mxu1 }
 0xd23   : > { %v2136_v47 = vmul.f32 %v2612_v44, %v2134_v17  ;;  %v2118_v50 = vpop.f32.mrb[15].mxu1 }
 0xd24   : > { %v2135_v57 = vmul.f32 %v2133_v60, %v2118_v50 }
 0xd25   : > { %2141 = vrot.lane.b32.xlu0 %v2136_v47, %s3138_s23 }
 0xd26   : > { %2139 = vrot.lane.b32.xlu1 %v2135_v57, %s3138_s23  ;;  %s2262_s23 = sshll.u32 %s244_s8, 4  ;;  %s3661_s23 = int_to_ptr.vmem [resolvable:$true] %s2262_s23 }
 0xd27   : > { %s3057_s19 = scalar_lea.vmem %s3661_s23, 256  ;;  %p3064_p5 = scmp.lt.s32.totalorder %s3661_s23, %s3062_s20 }
 0xd28   : > { %p3058_p11 = scmp.ne.s32.totalorder %s3661_s23, %s3057_s19  ;;  %p3065_p9 = scmp.lt.s32.totalorder %s3063_s29, %s3057_s19 }
 0xd2a   : > { %p3059_p1 = pnand %p3058_p11, %p3733_p0  ;;  %p3066_p12 = por %p3065_p9, %p3064_p5 }
 0xd2c   : > { %p3060_p3 = pneg %p3059_p1 }
 0xd2e   : > { %p3067_p2 = pnand %p3066_p12, %p3060_p3 }
 0xd97   : > { %v2142_v58 = vpop.permute.xlu0 %2141 }
 0xd98   : > { %2147 = vst.msk [vmem:[#allocation3 + $0x8] sm:$0xff] %vm2145_vm10, %v2142_v58  ;;  %v2140_v62 = vpop.permute.xlu1 %2139 }
 0xd99   : > { %2146 = vst.msk [vmem:[#allocation3] sm:$0xff] %vm2145_vm10, %v2140_v62 }
 0xd9f   : > { %v2149_v31 = vld [vmem:[#allocation3 + $0x8] sm:$0xff] }
 0xda0   : > { %v2148_v0 = vld [vmem:[#allocation3] sm:$0xff] }
 0xda1   : > { %2629 = vmatprep.mubr.msk.f32.mxu1 %vm263_vm0, %v2148_v0 }
 0xda2   : > { %2630 = vmatmul.mubr.msk.f32.vlgmr.msra.gmra.mrb[16].mxu1 %vm263_vm0, %v2149_v31 }
 0xe75   : > { %v2631_v2 = vpop.f32.mrb[16].mxu1 }
 0xe76   : > { %v2243_v33 = vadd.f32 %v2631_v2, %v2417_v1  ;;  %v2237_v29 = vpop.f32.mrb[17].mxu1 }
 0xe77   : > { %v2238_v3 = vadd.f32 %v2417_v1, %v2237_v29 }
 0xe78   : > { %2247 = vst.msk [vmem:[%s244_s8 + $0x8] sm:$0xff] %vm263_vm0, %v2243_v33 }
 0xe79   : > { %2246 = vst.msk [vmem:[%s244_s8] sm:$0xff] %vm263_vm0, %v2238_v3 }
 0xe7a   : > { %3070 = shalt.err (!%p3067_p2)
}
 0xe7b   : > { %s3071_s5 = scalar_lea.hbm %s3666_s28, 256  ;;  %s3075_s21 = scalar_lea.hbm %s3717_s4, 512 }
 0xe7c   : > { %p3072_p13 = scmp.ne.s32.totalorder %s3666_s28, %s3071_s5  ;;  %p3076_p4 = scmp.lt.u32.totalorder %s3666_s28, %s3717_s4 }
 0xe7d   : > { %p3077_p7 = scmp.lt.u32.totalorder %s3075_s21, %s3071_s5  ;;  %p3079_p11 = scmp.lt.u32.totalorder %s3071_s5, %s3666_s28 }
 0xe7e   : > { %p3073_p6 = pnand %p3072_p13, %p3733_p0 }
 0xe7f   : > { %p3078_p8 = por %p3077_p7, %p3076_p4 }
 0xe80   : > { %p3074_p10 = pneg %p3073_p6 }
 0xe81   : > { %p3080_p1 = por %p3079_p11, %p3078_p8 }
 0xe83   : > { %p3081_p3 = pnand %p3080_p1, %p3074_p10 }
 0xe85   : > { %3084 = shalt.err (!%p3081_p3)
}
 0xe86   : > { %s3153_s30 = smov 128  }
 0xe87   : > { %2754 = dma.vmem_to_hbm [thread:$0]  (%p3733_p0), %s3661_s23, 256, %s3666_s28, %s2249_s13, %s3153_s30, %s3153_s30, %s3150_s24  }
 0xe88 PF: > { %s2277_s6 = sand.u32 1, %s3115_s15   ;;  %p3734_p5 = scmp.ne.s32.totalorder %s3722_s22, 0 }
 0xe89   : > { %p3735_p9 = scmp.ge.s32.totalorder %s3127_s18, 2  ;;  %s2278_s9 = scalar_lea.sflag [#allocation6], %s2277_s6 }
 0xe8b   : > { %p2768_p12 = pnand %p3735_p9, %p3734_p5 }
 0xe8d   : > { %3110 = dma.done.wait (!%p2768_p12), %s2278_s9, 256  }
 0xe8e   : > { %3112 = vsyncadd (!%p2768_p12), %s2278_s9, 4294967040  ;;  %p18_p2 = scmp.ge.s32.totalorder %s3292_s11, 4   ;;  %s3736_s15 = smov %s3119_s16 }
 0xe8f   : > { %s3737_s16 = smov %s3123_s17  ;;  %s3738_s17 = smov %s3301_s14 }
 0xe90   : > { %s3739_s18 = smov %s3292_s11  ;;  %20 = sbr.rel (!%p18_p2) target bundleno = 6 (0x6), region = 89 }
 0xe97   :  { %2283 = vsyncpa [#allocation5], 1 }
 0xe98   :  { %2285 = vsyncpa [#allocation5 + $0x1], 1 }
 0xe99   :  { %2286 = vsyncpa [#allocation8], 1 }
 0xe9a   :  { %2287 = vsyncpa [#allocation6], 1 }
 0xe9b   :  { %2289 = vsyncpa [#allocation6 + $0x1], 1 }

</bundles_post_ra>
